<compile_context>
chip_gen: v6e
topology: v6e:2x2x1
jax: 0.10.0
libtpu: 0.0.40
codegen_flags: <defaults>
</compile_context>

<pallas_src>
import math
from collections import namedtuple
from functools import partial

import jax
import jax.numpy as jnp
from jax.experimental import pallas as pl
from jax.experimental.pallas import tpu as pltpu  # noqa: F401  (TPU backend assumed)

LossTuple = namedtuple(
    "LossTuple",
    ["rpn_reg_loss", "rpn_cls_loss", "roi_reg_loss", "roi_cls_loss", "total_loss"],
)

# ----------------------- model / problem constants -----------------------
IMG = 16          # image H = W
STRIDE = 4        # extractor downsampling
HF = WF = IMG // STRIDE
A = 9             # anchors per location
N_ANCHORS = HF * WF * A
N_ROIS = 64       # proposals kept after RPN
N_SAMPLE = 32     # rois sampled by proposal target layer
FEAT_C = 32
N_CLASS = 21      # 20 fg classes + background
RPN_SIGMA = 3.0
ROI_SIGMA = 1.0
LOC_MEAN = jnp.array([0.0, 0.0, 0.0, 0.0], jnp.float32)
LOC_STD = jnp.array([0.1, 0.1, 0.2, 0.2], jnp.float32)


# ----------------------------- Pallas kernels -----------------------------
def _matmul_bias_kernel(a_ref, b_ref, bias_ref, o_ref, *, relu):
    acc = jnp.dot(a_ref[...], b_ref[...], preferred_element_type=jnp.float32)
    acc = acc + bias_ref[...]
    if relu:
        acc = jnp.maximum(acc, 0.0)
    o_ref[...] = acc


def pallas_linear(x, w, b, relu=False, cost=None):
    """y = relu?(x @ w + b). Single-block kernel (shapes are tiny)."""
    M, K = x.shape
    K2, N = w.shape
    assert K == K2
    return pl.pallas_call(
        partial(_matmul_bias_kernel, relu=relu),
        out_shape=jax.ShapeDtypeStruct((M, N), jnp.float32),
        cost_estimate=cost,
    )(x.astype(jnp.float32), w.astype(jnp.float32), b.reshape(1, N).astype(jnp.float32))


def _mlp2_kernel(x_ref, w1_ref, b1_ref, w2_ref, b2_ref, o_ref):
    """Fused two-layer matmul: out = relu(x @ w1 + b1) @ w2 + b2.

    Keeps the hidden activation as an in-register value — no HBM round trip and
    only a single pallas_call launch for what used to be 2-3 launches.
    """
    h = jnp.dot(x_ref[...], w1_ref[...], preferred_element_type=jnp.float32) + b1_ref[...]
    h = jnp.maximum(h, 0.0)
    o_ref[...] = jnp.dot(h, w2_ref[...], preferred_element_type=jnp.float32) + b2_ref[...]


def pallas_mlp2(x, w1, b1, w2, b2, cost=None):
    M, K = x.shape
    K2, H = w1.shape
    H2, N = w2.shape
    assert K == K2 and H == H2
    return pl.pallas_call(
        _mlp2_kernel,
        out_shape=jax.ShapeDtypeStruct((M, N), jnp.float32),
        cost_estimate=cost,
    )(x.astype(jnp.float32),
      w1.astype(jnp.float32), b1.reshape(1, H).astype(jnp.float32),
      w2.astype(jnp.float32), b2.reshape(1, N).astype(jnp.float32))


def _losses_kernel(rpn_pred_ref, rpn_gt_ref, rpn_lab_ref, rpn_logit_ref,
                   roi_pred_ref, roi_gt_ref, roi_lab_lane_ref,
                   roi_logit_ref, roi_lab_col_ref,
                   rpn_reg_ref, rpn_cls_ref, roi_reg_ref, roi_cls_ref):
    """All four losses in one launch.

    Smooth-L1 inputs are lane-dense: pred/gt are (4, N) with the N anchors/rois
    on the 128-lane axis; labels are (1, N) and broadcast over the 4 coord rows.
    RPN cross-entropy (C=2) is done elementwise on two (1, N) rows (logaddexp),
    so no lane-axis reduce over a 2-wide axis is needed.
    """

    def smooth_l1(pred, gt, label, sigma):
        # pred, gt: (4, N) f32 ; label: (1, N) i32
        sigma2 = sigma * sigma
        in_w = (label > 0).astype(jnp.float32)                 # (1,N) -> bcast over coords
        diff = in_w * (pred - gt)
        abs_diff = jnp.abs(diff)
        flag = (abs_diff < (1.0 / sigma2)).astype(jnp.float32)
        y = flag * (sigma2 * 0.5) * diff * diff + (1.0 - flag) * (abs_diff - 0.5 / sigma2)
        total = jnp.sum(jnp.sum(y, axis=1, keepdims=True), axis=0, keepdims=True)   # (1,1)
        num = jnp.sum((label >= 0).astype(jnp.float32), axis=1, keepdims=True)      # (1,1)
        return total / jnp.maximum(num, 1.0)

    # --- RPN / ROI smooth-L1 regression losses ---
    rpn_reg_ref[...] = smooth_l1(rpn_pred_ref[...], rpn_gt_ref[...],
                                 rpn_lab_ref[...], RPN_SIGMA)
    roi_reg_ref[...] = smooth_l1(roi_pred_ref[...], roi_gt_ref[...],
                                 roi_lab_lane_ref[...], ROI_SIGMA)

    # --- RPN binary cross-entropy (C=2), ignore_index=-1, lane-dense ---
    logits = rpn_logit_ref[...]                                # (2, N)
    l0 = logits[0:1, :]
    l1 = logits[1:2, :]
    lab = rpn_lab_ref[...]                                     # (1, N) i32
    m = jnp.maximum(l0, l1)
    lse = m + jnp.log(jnp.exp(l0 - m) + jnp.exp(l1 - m))       # (1, N)
    picked = jnp.where(lab == 1, l1, l0)                       # (1, N)
    valid = (lab != -1).astype(jnp.float32)
    lsum = jnp.sum((lse - picked) * valid, axis=1, keepdims=True)       # (1,1)
    vsum = jnp.sum(valid, axis=1, keepdims=True)                        # (1,1)
    rpn_cls_ref[...] = lsum / jnp.maximum(vsum, 1.0)

    # --- ROI cross-entropy over 21 classes, ignore_index=-100 ---
    rl = roi_logit_ref[...]                                    # (R, C)
    rlab = roi_lab_col_ref[...]                                # (R, 1) i32
    R, C = rl.shape
    m2 = jnp.max(rl, axis=-1, keepdims=True)
    lse2 = m2 + jnp.log(jnp.sum(jnp.exp(rl - m2), axis=-1, keepdims=True))   # (R,1)
    col = jax.lax.broadcasted_iota(jnp.int32, (R, C), 1)
    onehot = (col == rlab).astype(jnp.float32)
    picked2 = jnp.sum(onehot * rl, axis=-1, keepdims=True)                   # (R,1)
    valid2 = (rlab != -100).astype(jnp.float32)
    lsum2 = jnp.sum((lse2 - picked2) * valid2, axis=0, keepdims=True)        # (1,1)
    vsum2 = jnp.sum(valid2, axis=0, keepdims=True)                           # (1,1)
    roi_cls_ref[...] = lsum2 / jnp.maximum(vsum2, 1.0)


def pallas_losses(rpn_pred, rpn_gt, rpn_label, rpn_logits,
                  roi_pred, roi_gt, roi_label, roi_logits):
    """Single fused launch for (rpn_reg, rpn_cls, roi_reg, roi_cls)."""
    n_a = rpn_pred.shape[0]
    n_r = roi_pred.shape[0]
    outs = pl.pallas_call(
        _losses_kernel,
        out_shape=tuple(jax.ShapeDtypeStruct((1, 1), jnp.float32) for _ in range(4)),
        cost_estimate=pl.CostEstimate(flops=30_000, transcendentals=2_000,
                                      bytes_accessed=20_000),
    )(
        rpn_pred.T.astype(jnp.float32),                  # (4, n_a) lane-dense
        rpn_gt.T.astype(jnp.float32),                    # (4, n_a)
        rpn_label.reshape(1, n_a).astype(jnp.int32),     # (1, n_a)
        rpn_logits.T.astype(jnp.float32),                # (2, n_a)
        roi_pred.T.astype(jnp.float32),                  # (4, n_r)
        roi_gt.T.astype(jnp.float32),                    # (4, n_r)
        roi_label.reshape(1, n_r).astype(jnp.int32),     # (1, n_r)
        roi_logits.astype(jnp.float32),                  # (n_r, C)
        roi_label.reshape(n_r, 1).astype(jnp.int32),     # (n_r, 1)
    )
    return outs[0][0, 0], outs[1][0, 0], outs[2][0, 0], outs[3][0, 0]


# ------------------------------ box utilities ------------------------------
def bbox_iou(a, b):  # boxes (y1,x1,y2,x2)
    tl = jnp.maximum(a[:, None, :2], b[None, :, :2])
    br = jnp.minimum(a[:, None, 2:], b[None, :, 2:])
    wh = jnp.clip(br - tl, 0.0)
    inter = wh[..., 0] * wh[..., 1]
    area_a = (a[:, 2] - a[:, 0]) * (a[:, 3] - a[:, 1])
    area_b = (b[:, 2] - b[:, 0]) * (b[:, 3] - b[:, 1])
    return inter / (area_a[:, None] + area_b[None, :] - inter)


def bbox2loc(src, dst):
    eps = 1e-6
    h = jnp.maximum(src[:, 2] - src[:, 0], eps)
    w = jnp.maximum(src[:, 3] - src[:, 1], eps)
    cy = src[:, 0] + 0.5 * h
    cx = src[:, 1] + 0.5 * w
    bh = jnp.maximum(dst[:, 2] - dst[:, 0], eps)
    bw = jnp.maximum(dst[:, 3] - dst[:, 1], eps)
    bcy = dst[:, 0] + 0.5 * bh
    bcx = dst[:, 1] + 0.5 * bw
    return jnp.stack([(bcy - cy) / h, (bcx - cx) / w,
                      jnp.log(bh / h), jnp.log(bw / w)], axis=1)


def loc2bbox(src, loc):
    h = src[:, 2] - src[:, 0]
    w = src[:, 3] - src[:, 1]
    cy = src[:, 0] + 0.5 * h
    cx = src[:, 1] + 0.5 * w
    ncy = loc[:, 0] * h + cy
    ncx = loc[:, 1] * w + cx
    nh = jnp.exp(loc[:, 2]) * h
    nw = jnp.exp(loc[:, 3]) * w
    return jnp.stack([ncy - 0.5 * nh, ncx - 0.5 * nw,
                      ncy + 0.5 * nh, ncx + 0.5 * nw], axis=1)


def generate_anchors():
    base, scales, ratios = 4.0, (1.0, 2.0, 4.0), (0.5, 1.0, 2.0)
    base_anchors = []
    for r in ratios:
        for s in scales:
            h = base * s * math.sqrt(r)
            w = base * s / math.sqrt(r)
            base_anchors.append([-h / 2, -w / 2, h / 2, w / 2])
    base_anchors = jnp.array(base_anchors, jnp.float32)                # (A,4)
    ys = (jnp.arange(HF, dtype=jnp.float32) + 0.5) * STRIDE
    xs = (jnp.arange(WF, dtype=jnp.float32) + 0.5) * STRIDE
    cy, cx = jnp.meshgrid(ys, xs, indexing="ij")
    shifts = jnp.stack([cy, cx, cy, cx], axis=-1).reshape(-1, 1, 4)    # (HF*WF,1,4)
    return (shifts + base_anchors[None]).reshape(-1, 4)                # (N_ANCHORS,4)


# -------------------------- synthetic Faster R-CNN --------------------------
def init_params(key):
    ks = jax.random.split(key, 7)

    def w(k, shape, scale=0.05):
        return scale * jax.random.normal(k, shape, jnp.float32)

    return {
        "ext_w": w(ks[0], (STRIDE * STRIDE * 3, FEAT_C)),
        "ext_b": jnp.zeros((FEAT_C,), jnp.float32),
        "rpn_mid_w": w(ks[1], (9 * FEAT_C, FEAT_C)),
        "rpn_mid_b": jnp.zeros((FEAT_C,), jnp.float32),
        "rpn_cls_w": w(ks[2], (FEAT_C, 2 * A)),
        "rpn_cls_b": jnp.zeros((2 * A,), jnp.float32),
        "rpn_loc_w": w(ks[3], (FEAT_C, 4 * A)),
        "rpn_loc_b": jnp.zeros((4 * A,), jnp.float32),
        "fc_w": w(ks[4], (2 * 2 * FEAT_C, 64)),
        "fc_b": jnp.zeros((64,), jnp.float32),
        "cls_w": w(ks[5], (64, N_CLASS)),
        "cls_b": jnp.zeros((N_CLASS,), jnp.float32),
        "reg_w": w(ks[6], (64, N_CLASS * 4)),
        "reg_b": jnp.zeros((N_CLASS * 4,), jnp.float32),
    }


def extractor(params, images_nchw):
    x = jnp.transpose(images_nchw[0], (1, 2, 0))                       # (H,W,3) channels-last
    patches = (x.reshape(HF, STRIDE, WF, STRIDE, 3)
                 .transpose(0, 2, 1, 3, 4)
                 .reshape(HF * WF, STRIDE * STRIDE * 3))               # conv(k=4,s=4) as matmul
    feat = pallas_linear(
        patches, params["ext_w"], params["ext_b"], relu=True,
        cost=pl.CostEstimate(flops=50_000, transcendentals=0, bytes_accessed=12_000))
    return feat.reshape(HF, WF, FEAT_C)


def _im2col3x3(feat_hwc):
    H, W, C = feat_hwc.shape
    xp = jnp.pad(feat_hwc, ((1, 1), (1, 1), (0, 0)))
    cols = [xp[dy:dy + H, dx:dx + W, :] for dy in range(3) for dx in range(3)]
    return jnp.concatenate(cols, axis=-1).reshape(H * W, 9 * C)


def rpn(params, feat_hwc, image_size, anchors):
    # One fused kernel: mid = relu(im2col @ W_mid + b), then a single concatenated
    # (cls | loc) matmul -> one lane-denser (HF*WF, 54) output store.
    patches = _im2col3x3(feat_hwc)                                      # (16, 9*C)
    head_w = jnp.concatenate([params["rpn_cls_w"], params["rpn_loc_w"]], axis=1)  # (C, 54)
    head_b = jnp.concatenate([params["rpn_cls_b"], params["rpn_loc_b"]], axis=0)  # (54,)
    out = pallas_mlp2(
        patches, params["rpn_mid_w"], params["rpn_mid_b"], head_w, head_b,
        cost=pl.CostEstimate(flops=360_000, transcendentals=0, bytes_accessed=70_000))
    scores = out[:, :2 * A].reshape(-1, 2)                              # (N_ANCHORS, 2)
    locs = out[:, 2 * A:].reshape(-1, 4)                                # (N_ANCHORS, 4)
    # proposal layer: decode + clip + top-k by fg score
    # TODO(synk): NMS has no clean static Pallas equivalent; deterministic top-k used instead.
    props = loc2bbox(anchors, locs)
    H, W = image_size
    props = jnp.stack([jnp.clip(props[:, 0], 0.0, H), jnp.clip(props[:, 1], 0.0, W),
                       jnp.clip(props[:, 2], 0.0, H), jnp.clip(props[:, 3], 0.0, W)], axis=1)
    order = jnp.argsort(-scores[:, 1])
    rois = props[order[:N_ROIS]]
    rois_idx = jnp.zeros((N_ROIS,), jnp.int32)
    return rois, rois_idx, anchors, locs[None], scores[None]


def proposal_target_layer(rois, gt_bbox, gt_label, loc_mean, loc_std):
    # TODO(synk): random fg/bg sampling replaced with deterministic IoU-descending top-k.
    all_rois = jnp.concatenate([rois, gt_bbox], axis=0)
    iou = bbox_iou(all_rois, gt_bbox)
    max_iou = iou.max(axis=1)
    assign = iou.argmax(axis=1)
    labels = jnp.where(max_iou >= 0.5, gt_label[assign] + 1, 0).astype(jnp.int32)
    keep = jnp.argsort(-max_iou)[:N_SAMPLE]
    sample_rois = all_rois[keep]
    roi_gt_labels = labels[keep]
    gt_loc = (bbox2loc(sample_rois, gt_bbox[assign][keep]) - loc_mean) / loc_std
    return sample_rois, gt_loc, roi_gt_labels


def anchor_target_layer(gt_bbox, anchors, image_size):
    # TODO(synk): 256-anchor random subsampling omitted; deterministic thresholds only.
    H, W = image_size
    inside = ((anchors[:, 0] >= 0) & (anchors[:, 1] >= 0)
              & (anchors[:, 2] <= H) & (anchors[:, 3] <= W))
    iou = bbox_iou(anchors, gt_bbox)
    max_iou = iou.max(axis=1)
    argmax = iou.argmax(axis=1)
    gt_max = iou.max(axis=0)
    is_gt_argmax = (iou == gt_max[None, :]).any(axis=1)
    label = jnp.full((anchors.shape[0],), -1, jnp.int32)
    label = jnp.where(inside & (max_iou < 0.3), 0, label)
    label = jnp.where(inside & is_gt_argmax, 1, label)
    label = jnp.where(inside & (max_iou >= 0.7), 1, label)
    loc = bbox2loc(anchors, gt_bbox[argmax])
    return loc, label


def head(params, feat_hwc, rois, roi_index):
    del roi_index  # single image
    scale = 1.0 / STRIDE
    ph = pw = 2
    by = rois[:, 0:1] + (jnp.arange(ph, dtype=jnp.float32)[None] + 0.5) * (rois[:, 2:3] - rois[:, 0:1]) / ph
    bx = rois[:, 1:2] + (jnp.arange(pw, dtype=jnp.float32)[None] + 0.5) * (rois[:, 3:4] - rois[:, 1:2]) / pw
    iy = jnp.clip(jnp.floor(by * scale), 0, HF - 1).astype(jnp.int32)          # (R,2)
    ix = jnp.clip(jnp.floor(bx * scale), 0, WF - 1).astype(jnp.int32)          # (R,2)
    flat_idx = iy[:, :, None] * WF + ix[:, None, :]                            # (R,2,2)
    pooled = feat_hwc.reshape(HF * WF, FEAT_C)[flat_idx]                       # RoI pool gather (glue)
    pooled = pooled.reshape(rois.shape[0], -1)                                 # (R, 2*2*C)
    # One fused kernel: h = relu(pooled @ fc_w + b), then a single concatenated
    # (cls | reg) matmul -> one lane-dense (R, 105) output store.
    head_w = jnp.concatenate([params["cls_w"], params["reg_w"]], axis=1)       # (64, 105)
    head_b = jnp.concatenate([params["cls_b"], params["reg_b"]], axis=0)       # (105,)
    out = pallas_mlp2(
        pooled, params["fc_w"], params["fc_b"], head_w, head_b,
        cost=pl.CostEstimate(flops=960_000, transcendentals=0, bytes_accessed=95_000))
    roi_label_pred = out[:, :N_CLASS]                                          # (R, 21)
    roi_bbox_pred = out[:, N_CLASS:]                                           # (R, 84)
    return roi_label_pred, roi_bbox_pred


# --------------------------- trainer forward pass ---------------------------
def faster_rcnn_trainer_forward(params, images, gt_bboxes, gt_labels):
    _, _, H, W = images.shape
    image_size = (H, W)
    gt_bbox = gt_bboxes[0]
    gt_label = gt_labels[0]

    anchors = generate_anchors()
    features = extractor(params, images)
    rois, rois_idx, anchors, rpn_offset_scale_pred, rpn_bbox_bf_pred = rpn(
        params, features, image_size, anchors)
    rpn_offset_scale_pred = rpn_offset_scale_pred[0]
    rpn_bbox_bf_pred = rpn_bbox_bf_pred[0]

    roi_samples, roi_gt_bbox, roi_gt_labels = proposal_target_layer(
        rois, gt_bbox, gt_label, LOC_MEAN, LOC_STD)
    sample_roi_index = jnp.zeros((roi_samples.shape[0],), jnp.int32)
    roi_label_pred, roi_bbox_pred = head(params, features, roi_samples, sample_roi_index)

    rpn_offset_scale_gt, rpn_label_gt = anchor_target_layer(gt_bbox, anchors, image_size)

    sample_num = roi_bbox_pred.shape[0]
    roi_bbox_pred_sel = roi_bbox_pred.reshape(sample_num, -1, 4)[
        jnp.arange(sample_num), roi_gt_labels]

    # All four losses in a single fused Pallas launch.
    rpn_reg_loss, rpn_cls_loss, roi_reg_loss, roi_cls_loss = pallas_losses(
        rpn_offset_scale_pred, rpn_offset_scale_gt, rpn_label_gt, rpn_bbox_bf_pred,
        roi_bbox_pred_sel, roi_gt_bbox, roi_gt_labels, roi_label_pred)

    total = rpn_reg_loss + rpn_cls_loss + roi_reg_loss + roi_cls_loss
    return LossTuple(rpn_reg_loss, rpn_cls_loss, roi_reg_loss, roi_cls_loss, total)


if __name__ == "__main__":
    key = jax.random.PRNGKey(0)
    k_img, k_par = jax.random.split(key)

    images = jax.random.normal(k_img, (1, 3, IMG, IMG), jnp.float32)          # NCHW like PyTorch
    gt_bboxes = jnp.array([[[2.0, 2.0, 10.0, 10.0],
                            [6.0, 5.0, 14.0, 13.0]]], jnp.float32)            # (1,2,4) y1,x1,y2,x2
    gt_labels = jnp.array([[3, 7]], jnp.int32)                                # (1,2) fg class ids

    params = init_params(k_par)

    losses = jax.jit(faster_rcnn_trainer_forward)(params, images, gt_bboxes, gt_labels)
    jax.block_until_ready(losses.total_loss)

    vals = [float(v) for v in losses]
    assert all(math.isfinite(v) for v in vals), f"non-finite losses: {vals}"
    print("KERNEL_OK")
</pallas_src>

<mosaic_0001>
module attributes {stable_mosaic.version = 11 : i64} {
  func.func @_matmul_bias_kernel(%arg0: memref<16x48xf32, #tpu.memory_space<vmem>>, %arg1: memref<48x32xf32, #tpu.memory_space<vmem>>, %arg2: memref<1x32xf32, #tpu.memory_space<vmem>>, %arg3: memref<16x32xf32, #tpu.memory_space<vmem>>) attributes {dimension_semantics = [], scalar_prefetch = 0 : i64, scratch_operands = 0 : i64, tpu.core_type = #tpu.core_type<tc>} {
    %c0 = arith.constant 0 : index
    %c0_0 = arith.constant 0 : index
    %0 = vector.load %arg0[%c0, %c0_0] : memref<16x48xf32, #tpu.memory_space<vmem>>, vector<16x48xf32>
    %c0_1 = arith.constant 0 : index
    %c0_2 = arith.constant 0 : index
    %1 = vector.load %arg1[%c0_1, %c0_2] : memref<48x32xf32, #tpu.memory_space<vmem>>, vector<48x32xf32>
    %cst = arith.constant dense<0.000000e+00> : vector<16x32xf32>
    %2 = tpu.matmul %0, %1, %cst {dimension_numbers = #tpu.dot_dimension_numbers<[1], [0], [0], [1], [0, 0, 1, 1], [], []>} : vector<16x48xf32>, vector<48x32xf32>, vector<16x32xf32> -> vector<16x32xf32>
    %c0_3 = arith.constant 0 : index
    %c0_4 = arith.constant 0 : index
    %3 = vector.load %arg2[%c0_3, %c0_4] : memref<1x32xf32, #tpu.memory_space<vmem>>, vector<1x32xf32>
    %4 = vector.broadcast %3 : vector<1x32xf32> to vector<16x32xf32>
    %5 = arith.addf %2, %4 : vector<16x32xf32>
    %cst_5 = arith.constant 0.000000e+00 : f32
    %6 = vector.broadcast %cst_5 : f32 to vector<16x32xf32>
    %7 = arith.maximumf %5, %6 : vector<16x32xf32>
    %c0_6 = arith.constant 0 : index
    %c0_7 = arith.constant 0 : index
    %8 = vector.load %arg3[%c0_6, %c0_7] : memref<16x32xf32, #tpu.memory_space<vmem>>, vector<16x32xf32>
    tpu.vector_store %arg3[%c0_6, %c0_7], %7 {strides = array<i32>} : memref<16x32xf32, #tpu.memory_space<vmem>>, vector<16x32xf32>,
    return
  }
}

module attributes {stable_mosaic.version = 11 : i64} {
  func.func @_mlp2_kernel(%arg0: memref<16x288xf32, #tpu.memory_space<vmem>>, %arg1: memref<288x32xf32, #tpu.memory_space<vmem>>, %arg2: memref<1x32xf32, #tpu.memory_space<vmem>>, %arg3: memref<32x54xf32, #tpu.memory_space<vmem>>, %arg4: memref<1x54xf32, #tpu.memory_space<vmem>>, %arg5: memref<16x54xf32, #tpu.memory_space<vmem>>) attributes {dimension_semantics = [], scalar_prefetch = 0 : i64, scratch_operands = 0 : i64, tpu.core_type = #tpu.core_type<tc>} {
    %c0 = arith.constant 0 : index
    %c0_0 = arith.constant 0 : index
    %0 = vector.load %arg0[%c0, %c0_0] : memref<16x288xf32, #tpu.memory_space<vmem>>, vector<16x288xf32>
    %c0_1 = arith.constant 0 : index
    %c0_2 = arith.constant 0 : index
    %1 = vector.load %arg1[%c0_1, %c0_2] : memref<288x32xf32, #tpu.memory_space<vmem>>, vector<288x32xf32>
    %cst = arith.constant dense<0.000000e+00> : vector<16x32xf32>
    %2 = tpu.matmul %0, %1, %cst {dimension_numbers = #tpu.dot_dimension_numbers<[1], [0], [0], [1], [0, 0, 1, 1], [], []>} : vector<16x288xf32>, vector<288x32xf32>, vector<16x32xf32> -> vector<16x32xf32>
    %c0_3 = arith.constant 0 : index
    %c0_4 = arith.constant 0 : index
    %3 = vector.load %arg2[%c0_3, %c0_4] : memref<1x32xf32, #tpu.memory_space<vmem>>, vector<1x32xf32>
    %4 = vector.broadcast %3 : vector<1x32xf32> to vector<16x32xf32>
    %5 = arith.addf %2, %4 : vector<16x32xf32>
    %cst_5 = arith.constant 0.000000e+00 : f32
    %6 = vector.broadcast %cst_5 : f32 to vector<16x32xf32>
    %7 = arith.maximumf %5, %6 : vector<16x32xf32>
    %c0_6 = arith.constant 0 : index
    %c0_7 = arith.constant 0 : index
    %8 = vector.load %arg3[%c0_6, %c0_7] : memref<32x54xf32, #tpu.memory_space<vmem>>, vector<32x54xf32>
    %cst_8 = arith.constant dense<0.000000e+00> : vector<16x54xf32>
    %9 = tpu.matmul %7, %8, %cst_8 {dimension_numbers = #tpu.dot_dimension_numbers<[1], [0], [0], [1], [0, 0, 1, 1], [], []>} : vector<16x32xf32>, vector<32x54xf32>, vector<16x54xf32> -> vector<16x54xf32>
    %c0_9 = arith.constant 0 : index
    %c0_10 = arith.constant 0 : index
    %10 = vector.load %arg4[%c0_9, %c0_10] : memref<1x54xf32, #tpu.memory_space<vmem>>, vector<1x54xf32>
    %11 = vector.broadcast %10 : vector<1x54xf32> to vector<16x54xf32>
    %12 = arith.addf %9, %11 : vector<16x54xf32>
    %c0_11 = arith.constant 0 : index
    %c0_12 = arith.constant 0 : index
    %13 = vector.load %arg5[%c0_11, %c0_12] : memref<16x54xf32, #tpu.memory_space<vmem>>, vector<16x54xf32>
    tpu.vector_store %arg5[%c0_11, %c0_12], %12 {strides = array<i32>} : memref<16x54xf32, #tpu.memory_space<vmem>>, vector<16x54xf32>,
    return
  }
}

module attributes {stable_mosaic.version = 11 : i64} {
  func.func @_mlp2_kernel(%arg0: memref<32x128xf32, #tpu.memory_space<vmem>>, %arg1: memref<128x64xf32, #tpu.memory_space<vmem>>, %arg2: memref<1x64xf32, #tpu.memory_space<vmem>>, %arg3: memref<64x105xf32, #tpu.memory_space<vmem>>, %arg4: memref<1x105xf32, #tpu.memory_space<vmem>>, %arg5: memref<32x105xf32, #tpu.memory_space<vmem>>) attributes {dimension_semantics = [], scalar_prefetch = 0 : i64, scratch_operands = 0 : i64, tpu.core_type = #tpu.core_type<tc>} {
    %c0 = arith.constant 0 : index
    %c0_0 = arith.constant 0 : index
    %0 = vector.load %arg0[%c0, %c0_0] : memref<32x128xf32, #tpu.memory_space<vmem>>, vector<32x128xf32>
    %c0_1 = arith.constant 0 : index
    %c0_2 = arith.constant 0 : index
    %1 = vector.load %arg1[%c0_1, %c0_2] : memref<128x64xf32, #tpu.memory_space<vmem>>, vector<128x64xf32>
    %cst = arith.constant dense<0.000000e+00> : vector<32x64xf32>
    %2 = tpu.matmul %0, %1, %cst {dimension_numbers = #tpu.dot_dimension_numbers<[1], [0], [0], [1], [0, 0, 1, 1], [], []>} : vector<32x128xf32>, vector<128x64xf32>, vector<32x64xf32> -> vector<32x64xf32>
    %c0_3 = arith.constant 0 : index
    %c0_4 = arith.constant 0 : index
    %3 = vector.load %arg2[%c0_3, %c0_4] : memref<1x64xf32, #tpu.memory_space<vmem>>, vector<1x64xf32>
    %4 = vector.broadcast %3 : vector<1x64xf32> to vector<32x64xf32>
    %5 = arith.addf %2, %4 : vector<32x64xf32>
    %cst_5 = arith.constant 0.000000e+00 : f32
    %6 = vector.broadcast %cst_5 : f32 to vector<32x64xf32>
    %7 = arith.maximumf %5, %6 : vector<32x64xf32>
    %c0_6 = arith.constant 0 : index
    %c0_7 = arith.constant 0 : index
    %8 = vector.load %arg3[%c0_6, %c0_7] : memref<64x105xf32, #tpu.memory_space<vmem>>, vector<64x105xf32>
    %cst_8 = arith.constant dense<0.000000e+00> : vector<32x105xf32>
    %9 = tpu.matmul %7, %8, %cst_8 {dimension_numbers = #tpu.dot_dimension_numbers<[1], [0], [0], [1], [0, 0, 1, 1], [], []>} : vector<32x64xf32>, vector<64x105xf32>, vector<32x105xf32> -> vector<32x105xf32>
    %c0_9 = arith.constant 0 : index
    %c0_10 = arith.constant 0 : index
    %10 = vector.load %arg4[%c0_9, %c0_10] : memref<1x105xf32, #tpu.memory_space<vmem>>, vector<1x105xf32>
    %11 = vector.broadcast %10 : vector<1x105xf32> to vector<32x105xf32>
    %12 = arith.addf %9, %11 : vector<32x105xf32>
    %c0_11 = arith.constant 0 : index
    %c0_12 = arith.constant 0 : index
    %13 = vector.load %arg5[%c0_11, %c0_12] : memref<32x105xf32, #tpu.memory_space<vmem>>, vector<32x105xf32>
    tpu.vector_store %arg5[%c0_11, %c0_12], %12 {strides = array<i32>} : memref<32x105xf32, #tpu.memory_space<vmem>>, vector<32x105xf32>,
    return
  }
}

module attributes {stable_mosaic.version = 11 : i64} {
  func.func @_losses_kernel(%arg0: memref<4x144xf32, #tpu.memory_space<vmem>>, %arg1: memref<4x144xf32, #tpu.memory_space<vmem>>, %arg2: memref<1x144xi32, #tpu.memory_space<vmem>>, %arg3: memref<2x144xf32, #tpu.memory_space<vmem>>, %arg4: memref<4x32xf32, #tpu.memory_space<vmem>>, %arg5: memref<4x32xf32, #tpu.memory_space<vmem>>, %arg6: memref<1x32xi32, #tpu.memory_space<vmem>>, %arg7: memref<32x21xf32, #tpu.memory_space<vmem>>, %arg8: memref<32x1xi32, #tpu.memory_space<vmem>>, %arg9: memref<1x1xf32, #tpu.memory_space<vmem>>, %arg10: memref<1x1xf32, #tpu.memory_space<vmem>>, %arg11: memref<1x1xf32, #tpu.memory_space<vmem>>, %arg12: memref<1x1xf32, #tpu.memory_space<vmem>>) attributes {dimension_semantics = [], scalar_prefetch = 0 : i64, scratch_operands = 0 : i64, tpu.core_type = #tpu.core_type<tc>} {
    %c0 = arith.constant 0 : index
    %c0_0 = arith.constant 0 : index
    %0 = vector.load %arg0[%c0, %c0_0] : memref<4x144xf32, #tpu.memory_space<vmem>>, vector<4x144xf32>
    %c0_1 = arith.constant 0 : index
    %c0_2 = arith.constant 0 : index
    %1 = vector.load %arg1[%c0_1, %c0_2] : memref<4x144xf32, #tpu.memory_space<vmem>>, vector<4x144xf32>
    %c0_3 = arith.constant 0 : index
    %c0_4 = arith.constant 0 : index
    %2 = vector.load %arg2[%c0_3, %c0_4] : memref<1x144xi32, #tpu.memory_space<vmem>>, vector<1x144xi32>
    %c0_i32 = arith.constant 0 : i32
    %3 = vector.broadcast %c0_i32 : i32 to vector<1x144xi32>
    %4 = arith.cmpi sgt, %2, %3 : vector<1x144xi32>
    %5 = arith.extui %4 : vector<1x144xi1> to vector<1x144xi32>
    %6 = arith.sitofp %5 : vector<1x144xi32> to vector<1x144xf32>
    %7 = arith.subf %0, %1 : vector<4x144xf32>
    %8 = vector.broadcast %6 : vector<1x144xf32> to vector<4x144xf32>
    %9 = arith.mulf %8, %7 : vector<4x144xf32>
    %10 = math.absf %9 : vector<4x144xf32>
    %cst = arith.constant 0.111111112 : f32
    %11 = vector.broadcast %cst : f32 to vector<4x144xf32>
    %12 = arith.cmpf olt, %10, %11 : vector<4x144xf32>
    %13 = arith.extui %12 : vector<4x144xi1> to vector<4x144xi32>
    %14 = arith.sitofp %13 : vector<4x144xi32> to vector<4x144xf32>
    %cst_5 = arith.constant 4.500000e+00 : f32
    %15 = vector.broadcast %cst_5 : f32 to vector<4x144xf32>
    %16 = arith.mulf %14, %15 : vector<4x144xf32>
    %17 = arith.mulf %16, %9 : vector<4x144xf32>
    %18 = arith.mulf %17, %9 : vector<4x144xf32>
    %cst_6 = arith.constant 1.000000e+00 : f32
    %19 = vector.broadcast %cst_6 : f32 to vector<4x144xf32>
    %20 = arith.subf %19, %14 : vector<4x144xf32>
    %cst_7 = arith.constant 0.055555556 : f32
    %21 = vector.broadcast %cst_7 : f32 to vector<4x144xf32>
    %22 = arith.subf %10, %21 : vector<4x144xf32>
    %23 = arith.mulf %20, %22 : vector<4x144xf32>
    %24 = arith.addf %18, %23 : vector<4x144xf32>
    %cst_8 = arith.constant dense<0.000000e+00> : vector<4xf32>
    %25 = vector.multi_reduction <add>, %24, %cst_8 [1] : vector<4x144xf32> to vector<4xf32>
    %26 = vector.shape_cast %25 : vector<4xf32> to vector<4x1xf32>
    %cst_9 = arith.constant dense<0.000000e+00> : vector<1xf32>
    %27 = vector.multi_reduction <add>, %26, %cst_9 [0] : vector<4x1xf32> to vector<1xf32>
    %28 = vector.shape_cast %27 : vector<1xf32> to vector<1x1xf32>
    %c0_i32_10 = arith.constant 0 : i32
    %29 = vector.broadcast %c0_i32_10 : i32 to vector<1x144xi32>
    %30 = arith.cmpi sge, %2, %29 : vector<1x144xi32>
    %31 = arith.extui %30 : vector<1x144xi1> to vector<1x144xi32>
    %32 = arith.sitofp %31 : vector<1x144xi32> to vector<1x144xf32>
    %cst_11 = arith.constant dense<0.000000e+00> : vector<1xf32>
    %33 = vector.multi_reduction <add>, %32, %cst_11 [1] : vector<1x144xf32> to vector<1xf32>
    %34 = vector.shape_cast %33 : vector<1xf32> to vector<1x1xf32>
    %cst_12 = arith.constant 1.000000e+00 : f32
    %35 = vector.broadcast %cst_12 : f32 to vector<1x1xf32>
    %36 = arith.maximumf %34, %35 : vector<1x1xf32>
    %37 = arith.divf %28, %36 : vector<1x1xf32>
    %c0_13 = arith.constant 0 : index
    %c0_14 = arith.constant 0 : index
    %38 = vector.load %arg9[%c0_13, %c0_14] : memref<1x1xf32, #tpu.memory_space<vmem>>, vector<1x1xf32>
    tpu.vector_store %arg9[%c0_13, %c0_14], %37 {strides = array<i32>} : memref<1x1xf32, #tpu.memory_space<vmem>>, vector<1x1xf32>,
    %c0_15 = arith.constant 0 : index
    %c0_16 = arith.constant 0 : index
    %39 = vector.load %arg4[%c0_15, %c0_16] : memref<4x32xf32, #tpu.memory_space<vmem>>, vector<4x32xf32>
    %c0_17 = arith.constant 0 : index
    %c0_18 = arith.constant 0 : index
    %40 = vector.load %arg5[%c0_17, %c0_18] : memref<4x32xf32, #tpu.memory_space<vmem>>, vector<4x32xf32>
    %c0_19 = arith.constant 0 : index
    %c0_20 = arith.constant 0 : index
    %41 = vector.load %arg6[%c0_19, %c0_20] : memref<1x32xi32, #tpu.memory_space<vmem>>, vector<1x32xi32>
    %c0_i32_21 = arith.constant 0 : i32
    %42 = vector.broadcast %c0_i32_21 : i32 to vector<1x32xi32>
    %43 = arith.cmpi sgt, %41, %42 : vector<1x32xi32>
    %44 = arith.extui %43 : vector<1x32xi1> to vector<1x32xi32>
    %45 = arith.sitofp %44 : vector<1x32xi32> to vector<1x32xf32>
    %46 = arith.subf %39, %40 : vector<4x32xf32>
    %47 = vector.broadcast %45 : vector<1x32xf32> to vector<4x32xf32>
    %48 = arith.mulf %47, %46 : vector<4x32xf32>
    %49 = math.absf %48 : vector<4x32xf32>
    %cst_22 = arith.constant 1.000000e+00 : f32
    %50 = vector.broadcast %cst_22 : f32 to vector<4x32xf32>
    %51 = arith.cmpf olt, %49, %50 : vector<4x32xf32>
    %52 = arith.extui %51 : vector<4x32xi1> to vector<4x32xi32>
    %53 = arith.sitofp %52 : vector<4x32xi32> to vector<4x32xf32>
    %cst_23 = arith.constant 5.000000e-01 : f32
    %54 = vector.broadcast %cst_23 : f32 to vector<4x32xf32>
    %55 = arith.mulf %53, %54 : vector<4x32xf32>
    %56 = arith.mulf %55, %48 : vector<4x32xf32>
    %57 = arith.mulf %56, %48 : vector<4x32xf32>
    %cst_24 = arith.constant 1.000000e+00 : f32
    %58 = vector.broadcast %cst_24 : f32 to vector<4x32xf32>
    %59 = arith.subf %58, %53 : vector<4x32xf32>
    %cst_25 = arith.constant 5.000000e-01 : f32
    %60 = vector.broadcast %cst_25 : f32 to vector<4x32xf32>
    %61 = arith.subf %49, %60 : vector<4x32xf32>
    %62 = arith.mulf %59, %61 : vector<4x32xf32>
    %63 = arith.addf %57, %62 : vector<4x32xf32>
    %cst_26 = arith.constant dense<0.000000e+00> : vector<4xf32>
    %64 = vector.multi_reduction <add>, %63, %cst_26 [1] : vector<4x32xf32> to vector<4xf32>
    %65 = vector.shape_cast %64 : vector<4xf32> to vector<4x1xf32>
    %cst_27 = arith.constant dense<0.000000e+00> : vector<1xf32>
    %66 = vector.multi_reduction <add>, %65, %cst_27 [0] : vector<4x1xf32> to vector<1xf32>
    %67 = vector.shape_cast %66 : vector<1xf32> to vector<1x1xf32>
    %c0_i32_28 = arith.constant 0 : i32
    %68 = vector.broadcast %c0_i32_28 : i32 to vector<1x32xi32>
    %69 = arith.cmpi sge, %41, %68 : vector<1x32xi32>
    %70 = arith.extui %69 : vector<1x32xi1> to vector<1x32xi32>
    %71 = arith.sitofp %70 : vector<1x32xi32> to vector<1x32xf32>
    %cst_29 = arith.constant dense<0.000000e+00> : vector<1xf32>
    %72 = vector.multi_reduction <add>, %71, %cst_29 [1] : vector<1x32xf32> to vector<1xf32>
    %73 = vector.shape_cast %72 : vector<1xf32> to vector<1x1xf32>
    %cst_30 = arith.constant 1.000000e+00 : f32
    %74 = vector.broadcast %cst_30 : f32 to vector<1x1xf32>
    %75 = arith.maximumf %73, %74 : vector<1x1xf32>
    %76 = arith.divf %67, %75 : vector<1x1xf32>
    %c0_31 = arith.constant 0 : index
    %c0_32 = arith.constant 0 : index
    %77 = vector.load %arg11[%c0_31, %c0_32] : memref<1x1xf32, #tpu.memory_space<vmem>>, vector<1x1xf32>
    tpu.vector_store %arg11[%c0_31, %c0_32], %76 {strides = array<i32>} : memref<1x1xf32, #tpu.memory_space<vmem>>, vector<1x1xf32>,
    %c0_33 = arith.constant 0 : index
    %c0_34 = arith.constant 0 : index
    %78 = vector.load %arg3[%c0_33, %c0_34] : memref<2x144xf32, #tpu.memory_space<vmem>>, vector<2x144xf32>
    %79 = vector.extract_strided_slice %78 {offsets = [0, 0], sizes = [1, 144], strides = [1, 1]} : vector<2x144xf32> to vector<1x144xf32>
    %80 = vector.extract_strided_slice %78 {offsets = [1, 0], sizes = [1, 144], strides = [1, 1]} : vector<2x144xf32> to vector<1x144xf32>
    %c0_35 = arith.constant 0 : index
    %c0_36 = arith.constant 0 : index
    %81 = vector.load %arg2[%c0_35, %c0_36] : memref<1x144xi32, #tpu.memory_space<vmem>>, vector<1x144xi32>
    %82 = arith.maximumf %79, %80 : vector<1x144xf32>
    %83 = arith.subf %79, %82 : vector<1x144xf32>
    %84 = math.exp %83 : vector<1x144xf32>
    %85 = arith.subf %80, %82 : vector<1x144xf32>
    %86 = math.exp %85 : vector<1x144xf32>
    %87 = arith.addf %84, %86 : vector<1x144xf32>
    %88 = math.log %87 : vector<1x144xf32>
    %89 = arith.addf %82, %88 : vector<1x144xf32>
    %c1_i32 = arith.constant 1 : i32
    %90 = vector.broadcast %c1_i32 : i32 to vector<1x144xi32>
    %91 = arith.cmpi eq, %81, %90 : vector<1x144xi32>
    %92 = arith.select %91, %80, %79 : vector<1x144xi1>, vector<1x144xf32>
    %c-1_i32 = arith.constant -1 : i32
    %93 = vector.broadcast %c-1_i32 : i32 to vector<1x144xi32>
    %94 = arith.cmpi ne, %81, %93 : vector<1x144xi32>
    %95 = arith.extui %94 : vector<1x144xi1> to vector<1x144xi32>
    %96 = arith.sitofp %95 : vector<1x144xi32> to vector<1x144xf32>
    %97 = arith.subf %89, %92 : vector<1x144xf32>
    %98 = arith.mulf %97, %96 : vector<1x144xf32>
    %cst_37 = arith.constant dense<0.000000e+00> : vector<1xf32>
    %99 = vector.multi_reduction <add>, %98, %cst_37 [1] : vector<1x144xf32> to vector<1xf32>
    %100 = vector.shape_cast %99 : vector<1xf32> to vector<1x1xf32>
    %cst_38 = arith.constant dense<0.000000e+00> : vector<1xf32>
    %101 = vector.multi_reduction <add>, %96, %cst_38 [1] : vector<1x144xf32> to vector<1xf32>
    %102 = vector.shape_cast %101 : vector<1xf32> to vector<1x1xf32>
    %cst_39 = arith.constant 1.000000e+00 : f32
    %103 = vector.broadcast %cst_39 : f32 to vector<1x1xf32>
    %104 = arith.maximumf %102, %103 : vector<1x1xf32>
    %105 = arith.divf %100, %104 : vector<1x1xf32>
    %c0_40 = arith.constant 0 : index
    %c0_41 = arith.constant 0 : index
    %106 = vector.load %arg10[%c0_40, %c0_41] : memref<1x1xf32, #tpu.memory_space<vmem>>, vector<1x1xf32>
    tpu.vector_store %arg10[%c0_40, %c0_41], %105 {strides = array<i32>} : memref<1x1xf32, #tpu.memory_space<vmem>>, vector<1x1xf32>,
    %c0_42 = arith.constant 0 : index
    %c0_43 = arith.constant 0 : index
    %107 = vector.load %arg7[%c0_42, %c0_43] : memref<32x21xf32, #tpu.memory_space<vmem>>, vector<32x21xf32>
    %c0_44 = arith.constant 0 : index
    %c0_45 = arith.constant 0 : index
    %108 = vector.load %arg8[%c0_44, %c0_45] : memref<32x1xi32, #tpu.memory_space<vmem>>, vector<32x1xi32>
    %cst_46 = arith.constant dense<0xFF800000> : vector<32xf32>
    %109 = vector.multi_reduction <maximumf>, %107, %cst_46 [1] : vector<32x21xf32> to vector<32xf32>
    %110 = vector.shape_cast %109 : vector<32xf32> to vector<32x1xf32>
    %111 = vector.broadcast %110 : vector<32x1xf32> to vector<32x21xf32>
    %112 = arith.subf %107, %111 : vector<32x21xf32>
    %113 = math.exp %112 : vector<32x21xf32>
    %cst_47 = arith.constant dense<0.000000e+00> : vector<32xf32>
    %114 = vector.multi_reduction <add>, %113, %cst_47 [1] : vector<32x21xf32> to vector<32xf32>
    %115 = vector.shape_cast %114 : vector<32xf32> to vector<32x1xf32>
    %116 = math.log %115 : vector<32x1xf32>
    %117 = arith.addf %110, %116 : vector<32x1xf32>
    %118 = tpu.iota {dimensions = array<i32: 1>} : vector<32x21xi32>
    %119 = vector.broadcast %108 : vector<32x1xi32> to vector<32x21xi32>
    %120 = arith.cmpi eq, %118, %119 : vector<32x21xi32>
    %121 = arith.extui %120 : vector<32x21xi1> to vector<32x21xi32>
    %122 = arith.sitofp %121 : vector<32x21xi32> to vector<32x21xf32>
    %123 = arith.mulf %122, %107 : vector<32x21xf32>
    %cst_48 = arith.constant dense<0.000000e+00> : vector<32xf32>
    %124 = vector.multi_reduction <add>, %123, %cst_48 [1] : vector<32x21xf32> to vector<32xf32>
    %125 = vector.shape_cast %124 : vector<32xf32> to vector<32x1xf32>
    %c-100_i32 = arith.constant -100 : i32
    %126 = vector.broadcast %c-100_i32 : i32 to vector<32x1xi32>
    %127 = arith.cmpi ne, %108, %126 : vector<32x1xi32>
    %128 = arith.extui %127 : vector<32x1xi1> to vector<32x1xi32>
    %129 = arith.sitofp %128 : vector<32x1xi32> to vector<32x1xf32>
    %130 = arith.subf %117, %125 : vector<32x1xf32>
    %131 = arith.mulf %130, %129 : vector<32x1xf32>
    %cst_49 = arith.constant dense<0.000000e+00> : vector<1xf32>
    %132 = vector.multi_reduction <add>, %131, %cst_49 [0] : vector<32x1xf32> to vector<1xf32>
    %133 = vector.shape_cast %132 : vector<1xf32> to vector<1x1xf32>
    %cst_50 = arith.constant dense<0.000000e+00> : vector<1xf32>
    %134 = vector.multi_reduction <add>, %129, %cst_50 [0] : vector<32x1xf32> to vector<1xf32>
    %135 = vector.shape_cast %134 : vector<1xf32> to vector<1x1xf32>
    %cst_51 = arith.constant 1.000000e+00 : f32
    %136 = vector.broadcast %cst_51 : f32 to vector<1x1xf32>
    %137 = arith.maximumf %135, %136 : vector<1x1xf32>
    %138 = arith.divf %133, %137 : vector<1x1xf32>
    %c0_52 = arith.constant 0 : index
    %c0_53 = arith.constant 0 : index
    %139 = vector.load %arg12[%c0_52, %c0_53] : memref<1x1xf32, #tpu.memory_space<vmem>>, vector<1x1xf32>
    tpu.vector_store %arg12[%c0_52, %c0_53], %138 {strides = array<i32>} : memref<1x1xf32, #tpu.memory_space<vmem>>, vector<1x1xf32>,
    return
  }
}

</mosaic_0001>

<bundles_post_ra>
// kernel: mul.1
= control target key start
LH: loop header
LB: loop body
LE: loop exit
PB: predicated region body
PF: predicated region fallthrough
CT: control target
= control target key end

     0   :  { %s56_s0 = inlined_call_operand.vmem [shape: f32[144,1], index: 0, kind: input, shape index: {}]   ;;  %s57_s1 = inlined_call_operand.vmem [shape: f32[144,1], index: 1, kind: input, shape index: {}]   ;;  %s58_s2 = inlined_call_operand.vmem [shape: f32[144,1], index: 2, kind: output, shape index: {}]  }
   0x1   :  { %v3_v0 = vld [vmem:[%s56_s0] sm:$0x1]  ;;  %v20_v2 = vld [vmem:[%s56_s0 + $0x1] sm:$0x1] }
   0x2   :  { %v4_v1 = vld [vmem:[%s57_s1] sm:$0x1]  ;;  %v21_v4 = vld [vmem:[%s57_s1 + $0x1] sm:$0x1] }
   0x3   :  { %v7_v3 = vmul.f32 %v4_v1, %v3_v0  ;;  %v16_v5 = vmul.f32 %v21_v4, %v20_v2 }
   0x5   :  { %9 = vst [vmem:[%s58_s2] sm:$0x1] %v7_v3  ;;  %22 = vst [vmem:[%s58_s2 + $0x1] sm:$0x1] %v16_v5 }

// kernel: faster_rcnn_trainer_forward.4
= control target key start
LH: loop header
LB: loop body
LE: loop exit
PB: predicated region body
PF: predicated region fallthrough
CT: control target
= control target key end

     0   :  { %vm29_vm0 = vcmask 392192   ;;  %vm113_vm1 = vcmask 261120   ;;  %s201_s1 = inlined_call_operand.vmem [shape: f32[48,32], index: 1, kind: input, shape index: {}]   ;;  %s202_s0 = inlined_call_operand.vmem [shape: f32[16,48], index: 0, kind: input, shape index: {}]   ;;  %s203_s2 = inlined_call_operand.vmem [shape: f32[1,32], index: 2, kind: input, shape index: {}]   ;;  %s204_s3 = inlined_call_operand.vmem [shape: f32[16,32], index: 3, kind: output, shape index: {}]  }
   0x1   :  { %v21_v0 = vld [vmem:[%s201_s1 + $0x28] sm:$0xff]  ;;  %v20_v1 = vld [vmem:[%s201_s1 + $0x20] sm:$0xff]  ;;  %v19_v2 = vld [vmem:[%s201_s1 + $0x18] sm:$0xff] }
   0x2   :  { %131 = vmatprep.subr.mxu0 %v21_v0  ;;  %v14_v3 = vld [vmem:[%s202_s0] sm:$0xff]  ;;  %v18_v4 = vld [vmem:[%s201_s1 + $0x10] sm:$0xff]  ;;  %v17_v5 = vld [vmem:[%s201_s1 + $0x8] sm:$0xff] }
   0x3   :  { %132 = vmatpush3.msra.mxu0 %v21_v0  ;;  %143 = vmatprep.mubr.msk.f32.mxu0 %vm29_vm0, %v14_v3  ;;  %v16_v6 = vld [vmem:[%s201_s1] sm:$0xff]  ;;  %v15_v7 = vld [vmem:[%s202_s0 + $0x8] sm:$0xff] }
   0x4   :  { %133 = vmatprep.subr.mxu0 %v20_v1  ;;  %v120_v8 = vld [vmem:[%s203_s2] ss:$0 sm:$0xff] }
   0x5   :  { %134 = vmatpush3.msra.mxu0 %v20_v1 }
   0x6   :  { %135 = vmatprep.subr.mxu0 %v19_v2 }
   0x7   :  { %136 = vmatpush3.msra.mxu0 %v19_v2 }
   0x8   :  { %137 = vmatprep.subr.mxu0 %v18_v4 }
   0x9   :  { %138 = vmatpush3.msra.mxu0 %v18_v4 }
   0xa   :  { %139 = vmatprep.subr.mxu0 %v17_v5 }
   0xb   :  { %140 = vmatpush3.msra.mxu0 %v17_v5 }
   0xc   :  { %141 = vmatprep.subr.mxu0 %v16_v6 }
   0xd   :  { %142 = vmatpush3.msra.mxu0 %v16_v6 }
   0xe   :  { %144 = vmatmul.mubr.msk.f32.vlgmr.msra.gmra.mxu0 %vm29_vm0, %v15_v7 }
  0xce   :  { %v145_v9 = vpop.f32.mrf.mxu0 }
  0xcf   :  { %v108_v10 = vadd.f32 %v145_v9, %v120_v8 }
  0xd0   :  { %v102_v11 = vpop.f32.mrf.mxu0 }
  0xd1   :  { %v112_v12 = vmax.f32 %v108_v10, 0.0  ;;  %v103_v13 = vadd.f32 %v120_v8, %v102_v11 }
  0xd3   :  { %115 = vst.msk [vmem:[%s204_s3 + $0x8] sm:$0xff] %vm113_vm1, %v112_v12  ;;  %v111_v14 = vmax.f32 %v103_v13, 0.0 }
  0xd5   :  { %114 = vst.msk [vmem:[%s204_s3] sm:$0xff] %vm113_vm1, %v111_v14 }

// kernel: faster_rcnn_trainer_forward.5
= control target key start
LH: loop header
LB: loop body
LE: loop exit
PB: predicated region body
PF: predicated region fallthrough
CT: control target
= control target key end

     0   :  { %vm69_vm0 = vcmask 261120   ;;  %vm320_vm1 = vcmask 441344   ;;  %s589_s1 = inlined_call_operand.vmem [shape: f32[288,32], index: 1, kind: input, shape index: {}]   ;;  %s590_s0 = inlined_call_operand.vmem [shape: f32[16,288], index: 0, kind: input, shape index: {}]   ;;  %s591_s3 = inlined_call_operand.vmem [shape: f32[32,54], index: 3, kind: input, shape index: {}]   ;;  %s592_s2 = inlined_call_operand.vmem [shape: f32[1,32], index: 2, kind: input, shape index: {}]   ;;  %s593_s4 = inlined_call_operand.vmem [shape: f32[1,54], index: 4, kind: input, shape index: {}]   ;;  %s594_s5 = inlined_call_operand.vmem [shape: f32[16,54], index: 5, kind: output, shape index: {}]  }
   0x1   :  { %v57_v0 = vld [vmem:[%s589_s1 + $0xf8] sm:$0xff]  ;;  %v56_v2 = vld [vmem:[%s589_s1 + $0xf0] sm:$0xff]  ;;  %v55_v4 = vld [vmem:[%s589_s1 + $0xe8] sm:$0xff] }
   0x2   :  { %v41_v1 = vld [vmem:[%s589_s1 + $0x78] sm:$0xff]  ;;  %333 = vmatprep.subr.mxu0 %v57_v0  ;;  %v40_v3 = vld [vmem:[%s589_s1 + $0x70] sm:$0xff]  ;;  %v39_v5 = vld [vmem:[%s589_s1 + $0x68] sm:$0xff] }
   0x3   :  { %334 = vmatpush3.msra.mxu0 %v41_v1  ;;  %v54_v6 = vld [vmem:[%s589_s1 + $0xe0] sm:$0xff]  ;;  %v53_v8 = vld [vmem:[%s589_s1 + $0xd8] sm:$0xff]  ;;  %v52_v10 = vld [vmem:[%s589_s1 + $0xd0] sm:$0xff] }
   0x4   :  { %335 = vmatprep.subr.mxu0 %v56_v2  ;;  %v38_v7 = vld [vmem:[%s589_s1 + $0x60] sm:$0xff]  ;;  %v37_v9 = vld [vmem:[%s589_s1 + $0x58] sm:$0xff]  ;;  %v36_v11 = vld [vmem:[%s589_s1 + $0x50] sm:$0xff] }
   0x5   :  { %336 = vmatpush3.msra.mxu0 %v40_v3  ;;  %v61_v12 = vld [vmem:[%s589_s1 + $0x118] sm:$0xff]  ;;  %v51_v13 = vld [vmem:[%s589_s1 + $0xc8] sm:$0xff]  ;;  %v60_v14 = vld [vmem:[%s589_s1 + $0x110] sm:$0xff] }
   0x6   :  { %337 = vmatprep.subr.mxu0 %v55_v4  ;;  %383 = vmatprep.subr.mxu1 %v61_v12  ;;  %v35_v15 = vld [vmem:[%s589_s1 + $0x48] sm:$0xff]  ;;  %v50_v17 = vld [vmem:[%s589_s1 + $0xc0] sm:$0xff]  ;;  %v49_v20 = vld [vmem:[%s589_s1 + $0xb8] sm:$0xff] }
   0x7   :  { %338 = vmatpush3.msra.mxu0 %v39_v5  ;;  %384 = vmatpush3.msra.mxu1 %v61_v12  ;;  %v21_v16 = vld [vmem:[%s590_s0 + $0x8] sm:$0xff]  ;;  %v34_v19 = vld [vmem:[%s589_s1 + $0x40] sm:$0xff]  ;;  %v33_v22 = vld [vmem:[%s589_s1 + $0x38] sm:$0xff] }
   0x8   :  { %339 = vmatprep.subr.mxu0 %v54_v6  ;;  %385 = vmatprep.subr.mxu1 %v60_v14  ;;  %v59_v18 = vld [vmem:[%s589_s1 + $0x108] sm:$0xff]  ;;  %v58_v21 = vld [vmem:[%s589_s1 + $0x100] sm:$0xff]  ;;  %v48_v23 = vld [vmem:[%s589_s1 + $0xb0] sm:$0xff] }
   0x9   :  { %340 = vmatpush3.msra.mxu0 %v38_v7  ;;  %140 = vmatprep.mubr.f32.mxu0 %v21_v16  ;;  %v22_v24 = vld [vmem:[%s590_s0 + $0x10] sm:$0xff]  ;;  %v25_v26 = vld [vmem:[%s590_s0 + $0x28] sm:$0xff]  ;;  %v46_v29 = vld [vmem:[%s589_s1 + $0xa0] sm:$0xff] }
   0xa   :  { %341 = vmatprep.subr.mxu0 %v53_v8  ;;  %386 = vmatpush3.msra.mxu1 %v60_v14  ;;  %v32_v25 = vld [vmem:[%s589_s1 + $0x30] sm:$0xff]  ;;  %v47_v27 = vld [vmem:[%s589_s1 + $0xa8] sm:$0xff]  ;;  %v30_v30 = vld [vmem:[%s589_s1 + $0x20] sm:$0xff] }
   0xb   :  { %342 = vmatpush3.msra.mxu0 %v37_v9  ;;  %387 = vmatprep.subr.mxu1 %v59_v18  ;;  %v31_v28 = vld [vmem:[%s589_s1 + $0x28] sm:$0xff]  ;;  %v45_v31 = vld [vmem:[%s589_s1 + $0x98] sm:$0xff]  ;;  %v44_v33 = vld [vmem:[%s589_s1 + $0x90] sm:$0xff] }
   0xc   :  { %343 = vmatprep.subr.mxu0 %v52_v10  ;;  %388 = vmatpush3.msra.mxu1 %v59_v18  ;;  %v29_v32 = vld [vmem:[%s589_s1 + $0x18] sm:$0xff]  ;;  %v28_v34 = vld [vmem:[%s589_s1 + $0x10] sm:$0xff]  ;;  %v43_v35 = vld [vmem:[%s589_s1 + $0x88] sm:$0xff] }
   0xd   :  { %344 = vmatpush3.msra.mxu0 %v36_v11  ;;  %389 = vmatprep.subr.mxu1 %v58_v21  ;;  %v27_v36 = vld [vmem:[%s589_s1 + $0x8] sm:$0xff]  ;;  %v42_v37 = vld [vmem:[%s589_s1 + $0x80] sm:$0xff]  ;;  %v23_v41 = vld [vmem:[%s590_s0 + $0x18] sm:$0xff] }
   0xe   :  { %345 = vmatprep.subr.mxu0 %v51_v13  ;;  %390 = vmatpush3.msra.mxu1 %v58_v21  ;;  %v26_v38 = vld [vmem:[%s589_s1] sm:$0xff]  ;;  %v231_v42 = vld [vmem:[%s591_s3 + $0x18] sm:$0xff]  ;;  %v230_v43 = vld [vmem:[%s591_s3 + $0x10] sm:$0xff] }
   0xf   :  { %346 = vmatpush3.msra.mxu0 %v35_v15  ;;  %391 = vmatprep.mubr.msk.f32.mxu1 %vm69_vm0, %v22_v24  ;;  %v20_v39 = vld [vmem:[%s590_s0] sm:$0xff]  ;;  %v229_v44 = vld [vmem:[%s591_s3 + $0x8] sm:$0xff] }
  0x10   :  { %347 = vmatprep.subr.mxu0 %v50_v17  ;;  %392 = vmatmul.mubr.msk.f32.vlgmr.msra.gmra.mxu1 %vm69_vm0, %v25_v26  ;;  %v24_v40 = vld [vmem:[%s590_s0 + $0x20] sm:$0xff] }
  0x11   :  { %348 = vmatpush3.msra.mxu0 %v34_v19  ;;  %394 = vmatprep.subr.mxu1 %v231_v42  ;;  %v228_v45 = vld [vmem:[%s591_s3] sm:$0xff] }
  0x12   :  { %349 = vmatprep.subr.mxu0 %v49_v20  ;;  %395 = vmatpush3.msra.mxu1 %v231_v42  ;;  %v327_v49 = vld [vmem:[%s592_s2] ss:$0 sm:$0xff] }
  0x13   :  { %350 = vmatpush3.msra.mxu0 %v33_v22  ;;  %396 = vmatprep.subr.mxu1 %v230_v43  ;;  %v330_v61 = vld [vmem:[%s593_s4] ss:$0 sm:$0xff] }
  0x14   :  { %351 = vmatprep.subr.mxu0 %v48_v23  ;;  %397 = vmatpush3.msra.mxu1 %v230_v43 }
  0x15   :  { %352 = vmatpush3.msra.mxu0 %v32_v25  ;;  %398 = vmatprep.subr.mxu1 %v229_v44 }
  0x16   :  { %353 = vmatprep.subr.mxu0 %v47_v27  ;;  %399 = vmatpush3.msra.mxu1 %v229_v44 }
  0x17   :  { %354 = vmatpush3.msra.mxu0 %v31_v28  ;;  %400 = vmatprep.subr.mxu1 %v228_v45 }
  0x18   :  { %355 = vmatprep.subr.mxu0 %v46_v29  ;;  %401 = vmatpush3.msra.mxu1 %v228_v45 }
  0x19   :  { %356 = vmatpush3.msra.mxu0 %v30_v30 }
  0x1a   :  { %357 = vmatprep.subr.mxu0 %v45_v31 }
  0x1b   :  { %358 = vmatpush3.msra.mxu0 %v29_v32 }
  0x1c   :  { %359 = vmatprep.subr.mxu0 %v44_v33 }
  0x1d   :  { %360 = vmatpush3.msra.mxu0 %v28_v34 }
  0x1e   :  { %361 = vmatprep.subr.mxu0 %v43_v35 }
  0x1f   :  { %362 = vmatpush3.msra.mxu0 %v27_v36 }
  0x20   :  { %363 = vmatprep.subr.mxu0 %v42_v37 }
  0x21   :  { %364 = vmatpush3.msra.mxu0 %v26_v38 }
  0x22   :  { %141 = vmatmul.mubr.f32.vlgmr.msra.gmra.mxu0 %v20_v39 }
  0x23   :  { %145 = vmatprep.mubr.f32.mxu0 %v24_v40 }
  0x26   :  { %146 = vmatmul.mubr.f32.gmra.mxu0 %v23_v41 }
  0xd0   :  { %v393_v47 = vpop.f32.mrf.mxu1 }
  0xd2   :  { %v217_v52 = vpop.f32.mrf.mxu1 }
  0xe2   :  { %v365_v46 = vpop.f32.mrf.mxu0 }
  0xe4   :  { %v366_v48 = vpop.f32.mrf.mxu0 }
  0xe5   :  { %v367_v50 = vadd.f32 %v366_v48, %v365_v46 }
  0xe6   :  { %v368_v51 = vpop.f32.mrf.mxu0 }
  0xe7   :  { %v143_v53 = vadd.f32 %v367_v50, %v327_v49 }
  0xe8   :  { %v369_v54 = vpop.f32.mrf.mxu0 }
  0xe9   :  { %v370_v55 = vadd.f32 %v369_v54, %v368_v51  ;;  %v218_v56 = vadd.f32 %v217_v52, %v143_v53 }
  0xeb   :  { %v148_v57 = vadd.f32 %v370_v55, %v327_v49  ;;  %v226_v58 = vmax.f32 %v218_v56, 0.0 }
  0xed   :  { %v223_v59 = vadd.f32 %v393_v47, %v148_v57  ;;  %402 = vmatprep.mubr.msk.f32.mxu1 %vm69_vm0, %v226_v58 }
  0xef   :  { %v227_v60 = vmax.f32 %v223_v59, 0.0 }
  0xf1   :  { %403 = vmatmul.mubr.msk.f32.vlgmr.msra.gmra.mxu1 %vm69_vm0, %v227_v60 }
 0x1b1   :  { %v404_v62 = vpop.f32.mrf.mxu1 }
 0x1b2   :  { %v317_v63 = vadd.f32 %v404_v62, %v330_v61 }
 0x1b3   :  { %v311_v0 = vpop.f32.mrf.mxu1 }
 0x1b4   :  { %322 = vst.msk [vmem:[%s594_s5 + $0x8] sm:$0xff] %vm320_vm1, %v317_v63  ;;  %v312_v1 = vadd.f32 %v330_v61, %v311_v0 }
 0x1b6   :  { %321 = vst.msk [vmem:[%s594_s5] sm:$0xff] %vm320_vm1, %v312_v1 }

// kernel: neg.3
= control target key start
LH: loop header
LB: loop body
LE: loop exit
PB: predicated region body
PF: predicated region fallthrough
CT: control target
= control target key end

     0   :  { %s24_s0 = inlined_call_operand.vmem [shape: f32[66], index: 0, kind: input, shape index: {}]   ;;  %s25_s1 = inlined_call_operand.vmem [shape: f32[66], index: 1, kind: output, shape index: {}]  }
   0x1   :  { %v2_v0 = vld [vmem:[%s24_s0] sm:$0x1] }
   0x2   :  { %v5_v1 = vxor.u32 2147483648, %v2_v0 }
   0x4   :  { %7 = vst [vmem:[%s25_s1] sm:$0x1] %v5_v1 }

// kernel: faster_rcnn_trainer_forward.6
= control target key start
LH: loop header
LB: loop body
LE: loop exit
PB: predicated region body
PF: predicated region fallthrough
CT: control target
= control target key end

     0   :  { %vm151_vm0 = vcmask 523264   ;;  %vm249_vm1 = vcmask 859136   ;;  %s488_s1 = inlined_call_operand.vmem [shape: f32[128,64], index: 1, kind: input, shape index: {}]   ;;  %s489_s0 = inlined_call_operand.vmem [shape: f32[32,128], index: 0, kind: input, shape index: {}]   ;;  %s490_s3 = inlined_call_operand.vmem [shape: f32[64,105], index: 3, kind: input, shape index: {}]   ;;  %s491_s2 = inlined_call_operand.vmem [shape: f32[1,64], index: 2, kind: input, shape index: {}]   ;;  %s492_s4 = inlined_call_operand.vmem [shape: f32[1,105], index: 4, kind: input, shape index: {}]   ;;  %s493_s5 = inlined_call_operand.vmem [shape: f32[32,105], index: 5, kind: output, shape index: {}]  }
   0x1   :  { %v39_v0 = vld [vmem:[%s488_s1 + $0x78] sm:$0xff]  ;;  %v38_v1 = vld [vmem:[%s488_s1 + $0x70] sm:$0xff]  ;;  %v37_v2 = vld [vmem:[%s488_s1 + $0x68] sm:$0xff] }
   0x2   :  { %296 = vmatprep.subr.mxu0 %v39_v0  ;;  %v36_v3 = vld [vmem:[%s488_s1 + $0x60] sm:$0xff]  ;;  %v35_v5 = vld [vmem:[%s488_s1 + $0x58] sm:$0xff]  ;;  %v142_v7 = vld [vmem:[%s490_s3 + $0x30] sm:$0xff] }
   0x3   :  { %297 = vmatpush3.msra.mxu0 %v39_v0  ;;  %v20_v4 = vld [vmem:[%s489_s0] sm:$0xff]  ;;  %v143_v6 = vld [vmem:[%s490_s3 + $0x38] sm:$0xff]  ;;  %v34_v8 = vld [vmem:[%s488_s1 + $0x50] sm:$0xff] }
   0x4   :  { %298 = vmatprep.subr.mxu0 %v38_v1  ;;  %328 = vmatprep.mubr.f32.mxu0 %v20_v4  ;;  %v141_v9 = vld [vmem:[%s490_s3 + $0x28] sm:$0xff]  ;;  %v140_v11 = vld [vmem:[%s490_s3 + $0x20] sm:$0xff]  ;;  %v31_v13 = vld [vmem:[%s488_s1 + $0x38] sm:$0xff] }
   0x5   :  { %299 = vmatpush3.msra.mxu0 %v38_v1  ;;  %334 = vmatprep.subr.mxu1 %v143_v6  ;;  %v33_v10 = vld [vmem:[%s488_s1 + $0x48] sm:$0xff]  ;;  %v32_v12 = vld [vmem:[%s488_s1 + $0x40] sm:$0xff]  ;;  %v30_v14 = vld [vmem:[%s488_s1 + $0x30] sm:$0xff] }
   0x6   :  { %300 = vmatprep.subr.mxu0 %v37_v2  ;;  %335 = vmatpush3.msra.mxu1 %v143_v6  ;;  %v29_v15 = vld [vmem:[%s488_s1 + $0x28] sm:$0xff]  ;;  %v28_v16 = vld [vmem:[%s488_s1 + $0x20] sm:$0xff]  ;;  %v27_v17 = vld [vmem:[%s488_s1 + $0x18] sm:$0xff] }
   0x7   :  { %301 = vmatpush3.msra.mxu0 %v37_v2  ;;  %336 = vmatprep.subr.mxu1 %v142_v7  ;;  %v26_v18 = vld [vmem:[%s488_s1 + $0x10] sm:$0xff]  ;;  %v25_v19 = vld [vmem:[%s488_s1 + $0x8] sm:$0xff]  ;;  %v24_v20 = vld [vmem:[%s488_s1] sm:$0xff] }
   0x8   :  { %302 = vmatprep.subr.mxu0 %v36_v3  ;;  %337 = vmatpush3.msra.mxu1 %v142_v7  ;;  %v21_v21 = vld [vmem:[%s489_s0 + $0x8] sm:$0xff]  ;;  %v22_v22 = vld [vmem:[%s489_s0 + $0x10] sm:$0xff]  ;;  %v23_v23 = vld [vmem:[%s489_s0 + $0x18] sm:$0xff] }
   0x9   :  { %303 = vmatpush3.msra.mxu0 %v36_v3  ;;  %338 = vmatprep.subr.mxu1 %v141_v9  ;;  %v139_v24 = vld [vmem:[%s490_s3 + $0x18] sm:$0xff]  ;;  %v138_v25 = vld [vmem:[%s490_s3 + $0x10] sm:$0xff]  ;;  %v137_v26 = vld [vmem:[%s490_s3 + $0x8] sm:$0xff] }
   0xa   :  { %304 = vmatprep.subr.mxu0 %v35_v5  ;;  %339 = vmatpush3.msra.mxu1 %v141_v9  ;;  %v136_v27 = vld [vmem:[%s490_s3] sm:$0xff] }
   0xb   :  { %305 = vmatpush3.msra.mxu0 %v35_v5  ;;  %340 = vmatprep.subr.mxu1 %v140_v11  ;;  %v258_v28 = vld [vmem:[%s491_s2] ss:$0 sm:$0xff] }
   0xc   :  { %306 = vmatprep.subr.mxu0 %v34_v8  ;;  %341 = vmatpush3.msra.mxu1 %v140_v11  ;;  %v259_v41 = vld [vmem:[%s492_s4] ss:$0 sm:$0xff] }
   0xd   :  { %307 = vmatpush3.msra.mxu0 %v34_v8  ;;  %342 = vmatprep.subr.mxu1 %v139_v24 }
   0xe   :  { %308 = vmatprep.subr.mxu0 %v33_v10  ;;  %343 = vmatpush3.msra.mxu1 %v139_v24 }
   0xf   :  { %309 = vmatpush3.msra.mxu0 %v33_v10  ;;  %344 = vmatprep.subr.mxu1 %v138_v25 }
  0x10   :  { %310 = vmatprep.subr.mxu0 %v32_v12  ;;  %345 = vmatpush3.msra.mxu1 %v138_v25 }
  0x11   :  { %311 = vmatpush3.msra.mxu0 %v32_v12  ;;  %346 = vmatprep.subr.mxu1 %v137_v26 }
  0x12   :  { %312 = vmatprep.subr.mxu0 %v31_v13  ;;  %347 = vmatpush3.msra.mxu1 %v137_v26 }
  0x13   :  { %313 = vmatpush3.msra.mxu0 %v31_v13  ;;  %348 = vmatprep.subr.mxu1 %v136_v27 }
  0x14   :  { %314 = vmatprep.subr.mxu0 %v30_v14  ;;  %349 = vmatpush3.msra.mxu1 %v136_v27 }
  0x15   :  { %315 = vmatpush3.msra.mxu0 %v30_v14 }
  0x16   :  { %316 = vmatprep.subr.mxu0 %v29_v15 }
  0x17   :  { %317 = vmatpush3.msra.mxu0 %v29_v15 }
  0x18   :  { %318 = vmatprep.subr.mxu0 %v28_v16 }
  0x19   :  { %319 = vmatpush3.msra.mxu0 %v28_v16 }
  0x1a   :  { %320 = vmatprep.subr.mxu0 %v27_v17 }
  0x1b   :  { %321 = vmatpush3.msra.mxu0 %v27_v17 }
  0x1c   :  { %322 = vmatprep.subr.mxu0 %v26_v18 }
  0x1d   :  { %323 = vmatpush3.msra.mxu0 %v26_v18 }
  0x1e   :  { %324 = vmatprep.subr.mxu0 %v25_v19 }
  0x1f   :  { %325 = vmatpush3.msra.mxu0 %v25_v19 }
  0x20   :  { %326 = vmatprep.subr.mxu0 %v24_v20 }
  0x21   :  { %327 = vmatpush3.msra.mxu0 %v24_v20 }
  0x22   :  { %329 = vmatmul.mubr.f32.vlgmr.msra.gmra.mxu0 %v21_v21 }
  0x23   :  { %331 = vmatprep.mubr.f32.mxu0 %v22_v22 }
  0x26   :  { %332 = vmatmul.mubr.f32.gmra.mxu0 %v23_v23 }
  0xe2   :  { %v330_v29 = vpop.f32.mrf.mxu0 }
  0xe3   :  { %v119_v30 = vadd.f32 %v330_v29, %v258_v28 }
  0xe4   :  { %v113_v31 = vpop.f32.mrf.mxu0 }
  0xe5   :  { %v114_v32 = vadd.f32 %v258_v28, %v113_v31  ;;  %v133_v35 = vmax.f32 %v119_v30, 0.0 }
  0xe6   :  { %v333_v33 = vpop.f32.mrf.mxu0 }
  0xe7   :  { %v132_v34 = vmax.f32 %v114_v32, 0.0  ;;  %v129_v36 = vadd.f32 %v333_v33, %v258_v28 }
  0xe8   :  { %v123_v37 = vpop.f32.mrf.mxu0 }
  0xe9   :  { %v124_v38 = vadd.f32 %v258_v28, %v123_v37  ;;  %350 = vmatprep.mubr.msk.f32.mxu1 %vm151_vm0, %v132_v34  ;;  %v135_v40 = vmax.f32 %v129_v36, 0.0 }
  0xea   :  { %351 = vmatmul.mubr.msk.f32.vlgmr.msra.gmra.mxu1 %vm151_vm0, %v133_v35 }
  0xeb   :  { %v134_v39 = vmax.f32 %v124_v38, 0.0 }
  0xed   :  { %353 = vmatprep.mubr.msk.f32.mxu1 %vm151_vm0, %v134_v39 }
  0xee   :  { %354 = vmatmul.mubr.msk.f32.gmra.mxu1 %vm151_vm0, %v135_v40 }
 0x1aa   :  { %v352_v42 = vpop.f32.mrf.mxu1 }
 0x1ab   :  { %v236_v43 = vadd.f32 %v352_v42, %v259_v41 }
 0x1ac   :  { %v230_v44 = vpop.f32.mrf.mxu1 }
 0x1ad   :  { %251 = vst.msk [vmem:[%s493_s5 + $0x8] sm:$0xff] %vm249_vm1, %v236_v43  ;;  %v231_v45 = vadd.f32 %v259_v41, %v230_v44 }
 0x1ae   :  { %v355_v46 = vpop.f32.mrf.mxu1 }
 0x1af   :  { %250 = vst.msk [vmem:[%s493_s5] sm:$0xff] %vm249_vm1, %v231_v45  ;;  %v246_v47 = vadd.f32 %v355_v46, %v259_v41 }
 0x1b0   :  { %v240_v48 = vpop.f32.mrf.mxu1 }
 0x1b1   :  { %253 = vst.msk [vmem:[%s493_s5 + $0x18] sm:$0xff] %vm249_vm1, %v246_v47  ;;  %v241_v49 = vadd.f32 %v259_v41, %v240_v48 }
 0x1b3   :  { %252 = vst.msk [vmem:[%s493_s5 + $0x10] sm:$0xff] %vm249_vm1, %v241_v49 }

// kernel: faster_rcnn_trainer_forward.7
= control target key start
LH: loop header
LB: loop body
LE: loop exit
PB: predicated region body
PF: predicated region fallthrough
CT: control target
= control target key end

     0   :  { %18 = vsyncpa [#allocation3], 0  ;;  %s950_s0 = inlined_call_operand.vmem [shape: f32[4,144], index: 0, kind: input, shape index: {}]   ;;  %s951_s1 = inlined_call_operand.vmem [shape: f32[4,144], index: 1, kind: input, shape index: {}]   ;;  %s952_s2 = inlined_call_operand.vmem [shape: s32[1,144], index: 2, kind: input, shape index: {}]   ;;  %s953_s3 = inlined_call_operand.vmem [shape: f32[2,144], index: 3, kind: input, shape index: {}]   ;;  %s954_s4 = inlined_call_operand.vmem [shape: f32[4,32], index: 4, kind: input, shape index: {}]   ;;  %s955_s5 = inlined_call_operand.vmem [shape: f32[4,32], index: 5, kind: input, shape index: {}]   ;;  %s956_s6 = inlined_call_operand.vmem [shape: s32[1,32], index: 6, kind: input, shape index: {}]   ;;  %s957_s7 = inlined_call_operand.vmem [shape: f32[32,21], index: 7, kind: input, shape index: {}]   ;;  %s958_s8 = inlined_call_operand.vmem [shape: s32[32,1], index: 8, kind: input, shape index: {}]   ;;  %s959_s9 = inlined_call_operand.hbm [shape: f32[1,1], index: 9, kind: output, shape index: {0}]   ;;  %s960_s10 = inlined_call_operand.hbm [shape: f32[1,1], index: 10, kind: output, shape index: {1}]   ;;  %s961_s11 = inlined_call_operand.hbm [shape: f32[1,1], index: 11, kind: output, shape index: {2}]   ;;  %s962_s12 = inlined_call_operand.hbm [shape: f32[1,1], index: 12, kind: output, shape index: {3}]  }
   0x1   :  { %19 = vsyncpa [#allocation5], 0  ;;  %v693_v0 = vld [vmem:[%s957_s7] sm:$0xff]  ;;  %vm273_vm0 = vcmask 171008   ;;  %v698_v1 = vld [vmem:[%s957_s7 + $0x10] sm:$0xff]  ;;  %v617_v6 = vmov 0  }
   0x2   :  { %v703_v2 = vld [vmem:[%s957_s7 + $0x8] sm:$0xff]  ;;  %v274_v3 = vsel %vm273_vm0, %v693_v0, -inf  ;;  %v280_v4 = vsel %vm273_vm0, %v698_v1, -inf  ;;  %v712_v5 = vld [vmem:[%s957_s7 + $0x18] sm:$0xff]  ;;  %500 = vset.pattern.permute.xlu1 %v617_v6  ;;  %499 = vset.pattern.permute.xlu0 %v617_v6 }
   0x3   :  { %275 = vmax.xlane.f32.xlu0 %v274_v3  ;;  %281 = vmax.xlane.f32.xlu1 %v280_v4  ;;  %v277_v7 = vsel %vm273_vm0, %v703_v2, -inf  ;;  %v283_v8 = vsel %vm273_vm0, %v712_v5, -inf }
   0x4   :  { %20 = vsyncpa [#allocation8], 0  ;;  %v721_v9 = vld [vmem:[%s958_s8 + $0x8] sm:$0xff]  ;;  %v727_v10 = vld [vmem:[%s958_s8 + $0x10] sm:$0xff]  ;;  %v47_v21 = vlaneseq  ;;  %v618_v29 = vmov 0.0   ;;  %vm112_vm5 = vcmask 1040384  }
   0x5   :  { %v732_v11 = vld [vmem:[%s958_s8] sm:$0xff]  ;;  %v739_v12 = vld [vmem:[%s958_s8 + $0x18] sm:$0xff]  ;;  %v619_v56 = vmov 1966171168   ;;  %vm114_vm6 = vcmask 122880   ;;  %vm163_vm15 = vcmask 253952  }
   0x6   :  { %v745_v13 = vld [vmem:[%s953_s3] sm:$0xf]  ;;  %v760_v23 = vshrl.u32 %v47_v21, 7  ;;  %v197_v57 = vunpack.c.l.s4 %v619_v56 }
   0x7   :  { %278 = vmax.xlane.f32.xlu0 %v277_v7  ;;  %284 = vmax.xlane.f32.xlu1 %v283_v8  ;;  %v480_v14 = vrot.slane %v745_v13, 9  ;;  %v758_v22 = vld [vmem:[%s956_s6] sm:$0x1]  ;;  %v827_v7 = vand.u32 127, %v47_v21 }
   0x8   :  { %vm127_vm1 = vcmp.gt.s32.totalorder %v758_v22, 0  ;;  %v766_v24 = vld [vmem:[%s952_s2] sm:$0x3]  ;;  %v769_v25 = vsub.s32 0, %v760_v23  ;;  %v790_v35 = vsub.s32 1, %v760_v23  ;;  %v198_v4 = vunpack.c.0.s8 %v197_v57 }
   0x9   :  { %v749_v15 = vmax.f32 %v745_v13, %v480_v14  ;;  %v124_v27 = vld [vmem:[%s954_s4] sm:$0xf]  ;;  %v476_v30 = vsel %vm127_vm1, 1.0, %v618_v29  ;;  %vm42_vm2 = vcmp.gt.s32.totalorder %v766_v24, 0  ;;  %vm98_vm12 = vcmp.ge.s32.totalorder %v766_v24, 0 }
   0xa   :  { %v125_v28 = vld [vmem:[%s955_s5] sm:$0xf]  ;;  %v135_v37 = vrot.slane %v476_v30, %v769_v25  ;;  %v470_v42 = vsel %vm42_vm2, 1.0, %v618_v29  ;;  %vm160_vm13 = vcmp.ge.s32.totalorder %v758_v22, 0  ;;  %v475_v22 = vsel %vm98_vm12, 1.0, %v618_v29  ;;  %s622_s5 = smov [#allocation6]  }
   0xb   :  { %v182_v16 = vrot.slane %v749_v15, 7  ;;  %v178_v18 = vsub.f32 %v745_v13, %v749_v15  ;;  %v39_v31 = vld [vmem:[%s950_s0] sm:$0xff]  ;;  %v130_v36 = vsub.f32 %v124_v27, %v125_v28  ;;  %v50_v50 = vrot.slane %v470_v42, %v769_v25  ;;  %s441_s29 = sshll.u32 %s622_s5, 4  ;;  %s442_s29 = int_to_ptr.vmem [resolvable:$true] %s441_s29 }
   0xc   :  { %v40_v32 = vld [vmem:[%s951_s1] sm:$0xff]  ;;  %v54_v51 = vrot.slane %v470_v42, %v790_v35  ;;  %v620_v27 = vmov 857870592   ;;  %vm149_vm2 = vcmask 257024  }
   0xd   :  { %v184_v17 = vsub.f32 %v745_v13, %v182_v16  ;;  %v179_v20 = vmul.f32 1.442695, %v178_v18  ;;  %v45_v43 = vsub.f32 %v39_v31, %v40_v32  ;;  %v805_v48 = vld [vmem:[%s952_s2] sm:$0x3]  ;;  %v807_v49 = vmul.f32 %v135_v37, %v130_v36  ;;  %s621_s2 = smov [#allocation4]  }
   0xe   :  { %vm207_vm3 = vcmp.ne.s32.totalorder %v805_v48, 4294967295  ;;  %v201_v18 = vsub.s32 %v198_v4, %v760_v23  ;;  %v212_v28 = vunpack.c.l.s4 %v620_v27  ;;  %vm195_vm11 = vcmp.eq.s32.totalorder %v805_v48, 1  ;;  %s431_s4 = sshll.u32 %s621_s2, 4  ;;  %s432_s4 = int_to_ptr.vmem [resolvable:$true] %s431_s4 }
   0xf   :  { %v185_v19 = vmul.f32 1.442695, %v184_v17  ;;  %v58_v55 = vcombine.high %v45_v43, %v45_v43  ;;  %v138_v61 = vand.u32 2147483647, %v807_v49  ;;  %v819_v62 = vmul.f32 %v50_v50, %v45_v43  ;;  %s531_s30 = scalar_lea.vmem %s432_s4, 16  ;;  %s535_s7 = scalar_lea.vmem %s432_s4, 32 }
  0x10   :  { %v824_v3 = vsel %vm207_vm3, 1.0, %v618_v29  ;;  %v202_v36 = vrot.slane %v745_v13, %v201_v18  ;;  %vm365_vm3 = vcmp.ne.s32.totalorder %v721_v9, 4294967196  ;;  %p532_p0 = scmp.ne.s32.totalorder %s432_s4, %s531_s30  ;;  %p536_p1 = scmp.lt.s32.totalorder %s432_s4, %s432_s4 }
  0x11   :  { %501 = vpow2.f32 %v185_v19  ;;  %v821_v63 = vmul.f32 %v58_v55, %v54_v51  ;;  %vm139_vm4 = vcmp.lt.f32.partialorder %v138_v61, 1.0  ;;  %v62_v6 = vand.u32 2147483647, %v819_v62  ;;  %p537_p2 = scmp.lt.s32.totalorder %s535_s7, %s531_s30 }
  0x12   :  { %503 = vpow2.f32 %v179_v20  ;;  %v249_v8 = vrot.slane %v824_v3, %v769_v25  ;;  %v253_v14 = vrot.slane %v824_v3, %v790_v35  ;;  %v477_v19 = vsel %vm139_vm4, 1.0, %v618_v29 }
  0x13   :  { %v63_v16 = vand.u32 2147483647, %v821_v63  ;;  %vm64_vm8 = vcmp.lt.f32.partialorder %v62_v6, 0.11111111  ;;  %v142_v32 = vmul.f32 0.5, %v477_v19  ;;  %v145_v56 = vsub.f32 1.0, %v477_v19  ;;  %p538_p3 = por %p537_p2, %p536_p1 }
  0x14   :  { %v256_v21 = vsel %vm112_vm5, %v249_v8, 0.0  ;;  %v478_v57 = vadd.f32 -0.5, %v138_v61  ;;  %vm364_vm4 = vcmp.ne.s32.totalorder %v732_v11, 4294967196 }
  0x15   :  { %vm65_vm9 = vcmp.lt.f32.partialorder %v63_v16, 0.11111111  ;;  %v143_v51 = vmul.f32 %v142_v32, %v807_v49  ;;  %v105_v32 = vrot.slane %v475_v22, %v769_v25  ;;  %p539_p4 = pnand %p538_p3, %p532_p0 }
  0x16   :  { %v147_v19 = vmul.f32 %v478_v57, %v145_v56 }
  0x17   :  { %v144_v18 = vmul.f32 %v143_v51, %v807_v49 }
  0x18   :  { %328 = vperm.xlu1 %500, %v721_v9  }
  0x1c   :  { %331 = vperm.xlu1 %500, %v727_v10  }
  0x1d   :  { %325 = vperm.xlu0 %499, %v732_v11  }
  0x1e   :  { %v502_v26 = vpop.eup %501 }
  0x1f   :  { %v481_v38 = vrot.slane %v502_v26, 9  ;;  %v504_v39 = vpop.eup %503  ;;  %v257_v26 = vsel %vm114_vm6, %v253_v14, 0.0 }
  0x20   :  { %334 = vperm.xlu1 %500, %v739_v12  }
  0x21   :  { %v191_v52 = vadd.f32 %v504_v39, %v481_v38  ;;  %v471_v39 = vsel %vm64_vm8, 1.0, %v618_v29  ;;  %vm86_vm8 = vcmask 125952  }
  0x8c   :  { %v785_v33 = vpop.xlane.xlu0 %275  ;;  %v787_v34 = vpop.xlane.xlu1 %281 }
  0x8d   :  { %v286_v40 = vsub.f32 %v693_v0, %v785_v33  ;;  %v288_v41 = vsub.f32 %v698_v1, %v787_v34 }
  0x8f   :  { %v290_v44 = vmul.f32 1.442695, %v286_v40  ;;  %v294_v45 = vmul.f32 1.442695, %v288_v41  ;;  %v258_v40 = vadd.f32 %v257_v26, %v256_v21  ;;  %v472_v41 = vsel %vm65_vm9, 1.0, %v618_v29 }
  0x90   :  { %v798_v46 = vpop.xlane.xlu0 %278  ;;  %v800_v47 = vpop.xlane.xlu1 %284  ;;  %v76_v21 = vsub.f32 1.0, %v471_v39  ;;  %v77_v27 = vsub.f32 1.0, %v472_v41  ;;  %vm366_vm9 = vcmp.ne.s32.totalorder %v727_v10, 4294967196 }
  0x91   :  { %505 = vpow2.f32 %v290_v44  ;;  %v287_v53 = vsub.f32 %v703_v2, %v798_v46  ;;  %v289_v54 = vsub.f32 %v712_v5, %v800_v47  ;;  %v213_v44 = vunpack.c.0.s8 %v212_v28 }
  0x92   :  { %507 = vpow2.f32 %v294_v45  ;;  %v474_v28 = vadd.f32 -0.055555556, %v63_v16  ;;  %v489_v56 = vsel %vm366_vm9, 1.0, %v618_v29 }
  0x93   :  { %v292_v58 = vmul.f32 1.442695, %v287_v53  ;;  %v296_v59 = vmul.f32 1.442695, %v289_v54  ;;  %509 = vlog2.f32 %v191_v52  ;;  %v70_v52 = vmul.f32 4.5, %v471_v39 }
  0x94   :  { %v816_v60 = vpop.permute.xlu1 %328  ;;  %v203_v53 = vcombine.high %v202_v36, %v202_v36  ;;  %v216_v14 = vsub.s32 %v213_v44, %v760_v23  ;;  %v81_v16 = vmul.f32 %v474_v28, %v77_v27 }
  0x95   :  { %511 = vpow2.f32 %v292_v58  ;;  %vm337_vm14 = vcmp.eq.s32.totalorder %v827_v7, %v816_v60  ;;  %v71_v58 = vmul.f32 4.5, %v472_v41 }
  0x96   :  { %513 = vpow2.f32 %v296_v59  ;;  %v484_v61 = vsel %vm337_vm14, 1.0, %v618_v29  ;;  %v206_v24 = vsel %vm195_vm11, %v203_v53, %v202_v36  ;;  %vm384_vm11 = vcmask 7168  }
  0x97   :  { %v73_v26 = vmul.f32 %v71_v58, %v821_v63  ;;  %v401_v11 = vsel %vm384_vm11, %v489_v56, 0.0 }
  0x98   :  { %v332_v17 = vpop.permute.xlu1 %331  ;;  %v326_v20 = vpop.permute.xlu0 %325 }
  0x99   :  { %vm338_vm7 = vcmp.eq.s32.totalorder %v827_v7, %v332_v17  ;;  %vm336_vm10 = vcmp.eq.s32.totalorder %v827_v7, %v326_v20  ;;  %v72_v20 = vmul.f32 %v70_v52, %v819_v62  ;;  %v487_v52 = vsel %vm364_vm4, 1.0, %v618_v29 }
  0x9a   :  { %v485_v31 = vsel %vm338_vm7, 1.0, %v618_v29  ;;  %v483_v50 = vsel %vm336_vm10, 1.0, %v618_v29  ;;  %vm84_vm7 = vcmask 1043456   ;;  %vm367_vm10 = vcmp.ne.s32.totalorder %v739_v12, 4294967196 }
  0x9b   :  { %v350_v13 = vmul.f32 %v485_v31, %v698_v1  ;;  %v479_v1 = vsel %vm160_vm13, 1.0, %v618_v29  ;;  %v348_v8 = vmul.f32 %v483_v50, %v693_v0  ;;  %v473_v0 = vadd.f32 -0.055555556, %v62_v6 }
  0x9c   :  { %v335_v17 = vpop.permute.xlu1 %334  ;;  %v217_v31 = vrot.slane %v206_v24, %v216_v14  ;;  %v109_v6 = vrot.slane %v475_v22, %v790_v35  ;;  %v74_v36 = vmul.f32 %v72_v20, %v819_v62  ;;  %v916_v9 = vsel %vm367_vm10, 1.0, %v618_v29 }
  0x9d   :  { %v358_v60 = vsel %vm273_vm0, %v350_v13, 0.0  ;;  %vm339_vm1 = vcmp.eq.s32.totalorder %v827_v7, %v335_v17  ;;  %v352_v48 = vsel %vm273_vm0, %v348_v8, 0.0  ;;  %v75_v7 = vmul.f32 %v73_v26, %v821_v63 }
  0x9e   :  { %v506_v30 = vpop.eup %505  ;;  %v115_v63 = vsel %vm114_vm6, %v109_v6, 0.0 }
  0x9f   :  { %v508_v37 = vpop.eup %507  ;;  %v298_v38 = vsel %vm273_vm0, %v506_v30, 0.0  ;;  %v349_v30 = vmul.f32 %v484_v61, %v703_v2  ;;  %v148_v2 = vadd.f32 %v147_v19, %v144_v18 }
  0xa0   :  { %299 = vadd.xlane.f32.xlu1 %v298_v38  ;;  %v510_v42 = vpop.eup %509  ;;  %v304_v43 = vsel %vm273_vm0, %v508_v37, 0.0  ;;  %v80_v37 = vmul.f32 %v473_v0, %v76_v21  ;;  %v486_v38 = vsel %vm339_vm1, 1.0, %v618_v29 }
  0xa1   :  { %v193_v59 = vmul.f32 0.6931472, %v510_v42  ;;  %v355_v39 = vsel %vm273_vm0, %v349_v30, 0.0  ;;  %v227_v42 = vrot.slane %v824_v3, %v216_v14  ;;  %v351_v35 = vmul.f32 %v486_v38, %v712_v5 }
  0xa2   :  { %v512_v45 = vpop.eup %511  ;;  %v82_v62 = vadd.f32 %v80_v37, %v74_v36  ;;  %v150_v13 = vsel %vm149_vm2, %v148_v2, 0.0  ;;  %v237_v3 = vsub.s32 2, %v760_v23  ;;  %v905_v23 = vsel %vm365_vm3, 1.0, %v618_v29 }
  0xa3   :  { %v514_v54 = vpop.eup %513  ;;  %v301_v55 = vsel %vm273_vm0, %v512_v45, 0.0  ;;  %v194_v49 = vadd.f32 %v193_v59, %v749_v15  ;;  %v164_v15 = vsel %vm163_vm15, %v479_v1, 0.0  ;;  %v361_v5 = vsel %vm273_vm0, %v351_v35, 0.0 }
  0xa4   :  { %305 = vadd.xlane.f32.xlu1 %v304_v43  ;;  %302 = vadd.xlane.f32.xlu0 %v301_v55  ;;  %v307_v4 = vsel %vm273_vm0, %v514_v54, 0.0  ;;  %v83_v43 = vadd.f32 %v81_v16, %v75_v7  ;;  %v85_v50 = vsel %vm84_vm7, %v82_v62, 0.0  ;;  %v398_v54 = vsel %vm384_vm11, %v487_v52, 0.0 }
  0xa5   :  { %v219_v41 = vsub.f32 %v194_v49, %v217_v31  ;;  %v399_v55 = vsel %vm384_vm11, %v905_v23, 0.0  ;;  %v403_v59 = vsel %vm384_vm11, %v916_v9, 0.0  ;;  %vm122_vm0 = vcmask 0  }
  0xa6   :  { %v87_v51 = vsel %vm86_vm8, %v83_v43, 0.0  ;;  %v400_v57 = vadd.f32 %v399_v55, %v398_v54 }
  0xa7   :  { %v229_v44 = vmul.f32 %v227_v42, %v219_v41  ;;  %v88_v1 = vadd.f32 %v87_v51, %v85_v50 }
  0xa8   :  { %308 = vadd.xlane.f32.xlu1 %v307_v4  ;;  %359 = vadd.xlane.f32.xlu0 %v358_v60  ;;  %v402_v22 = vadd.f32 %v401_v11, %v400_v57 }
  0xa9   :  { %v234_v10 = vrot.slane %v229_v44, %v769_v25  ;;  %v238_v53 = vrot.slane %v229_v44, %v237_v3 }
  0xaa   :  { %v404_v4 = vadd.f32 %v403_v59, %v402_v22 }
  0xab   :  { %v241_v25 = vsel %vm112_vm5, %v234_v10, 0.0  ;;  %v242_v58 = vsel %vm114_vm6, %v238_v53, 0.0 }
  0xac   :  { %353 = vadd.xlane.f32.xlu1 %v352_v48  ;;  %259 = vadd.xlane.f32.xlu0 %v258_v40  ;;  %v113_v40 = vsel %vm112_vm5, %v105_v32, 0.0  ;;  %v243_v8 = vadd.f32 %v242_v58, %v241_v25  ;;  %v405_v14 = vrot.slane %v404_v4, 4 }
  0xad   :  { %v116_v45 = vadd.f32 %v115_v63, %v113_v40 }
  0xae   :  { %v406_v12 = vadd.f32 %v405_v14, %v404_v4 }
  0xb0   :  { %356 = vadd.xlane.f32.xlu1 %v355_v39  ;;  %165 = vadd.xlane.f32.xlu0 %v164_v15  ;;  %v407_v24 = vrot.slane %v406_v12, 2 }
  0xb2   :  { %v408_v27 = vadd.f32 %v407_v24, %v406_v12 }
  0xb4   :  { %362 = vadd.xlane.f32.xlu1 %v361_v5  ;;  %151 = vadd.xlane.f32.xlu0 %v150_v13  ;;  %v409_v36 = vrot.slane %v408_v27, 1 }
  0xb6   :  { %v410_v62 = vadd.f32 %v409_v36, %v408_v27 }
  0xb8   :  { %117 = vadd.xlane.f32.xlu1 %v116_v45  ;;  %v411_v50 = vmax.f32 %v410_v62, 1.0 }
  0xbc   :  { %89 = vadd.xlane.f32.xlu1 %v88_v1 }
  0xc0   :  { %244 = vadd.xlane.f32.xlu1 %v243_v8 }
 0x129   :  { %v300_v60 = vpop.xlane.xlu1 %299 }
 0x12a   :  { %515 = vlog2.f32 %v300_v60 }
 0x12d   :  { %v306_v61 = vpop.xlane.xlu1 %305  ;;  %v303_v17 = vpop.xlane.xlu0 %302 }
 0x12e   :  { %517 = vlog2.f32 %v306_v61 }
 0x12f   :  { %519 = vlog2.f32 %v303_v17 }
 0x131   :  { %v309_v29 = vpop.xlane.xlu1 %308  ;;  %v360_v18 = vpop.xlane.xlu0 %359 }
 0x132   :  { %521 = vlog2.f32 %v309_v29 }
 0x135   :  { %v354_v19 = vpop.xlane.xlu1 %353  ;;  %v260_v20 = vpop.xlane.xlu0 %259 }
 0x136   :  { %v261_v21 = vmax.f32 %v260_v20, 1.0 }
 0x137   :  { %v516_v0 = vpop.eup %515 }
 0x138   :  { %v311_v26 = vmul.f32 0.6931472, %v516_v0  ;;  %523 = vrcp.f32 %v261_v21 }
 0x139   :  { %v357_v28 = vpop.xlane.xlu1 %356  ;;  %v166_v49 = vpop.xlane.xlu0 %165 }
 0x13a   :  { %v318_v48 = vadd.f32 %v311_v26, %v785_v33  ;;  %v167_v30 = vmax.f32 %v166_v49, 1.0 }
 0x13b   :  { %v518_v31 = vpop.eup %517 }
 0x13c   :  { %v520_v32 = vpop.eup %519  ;;  %v315_v6 = vmul.f32 0.6931472, %v518_v31  ;;  %525 = vrcp.f32 %v167_v30  ;;  %v376_v38 = vsub.f32 %v318_v48, %v354_v19 }
 0x13d   :  { %v313_v37 = vmul.f32 0.6931472, %v520_v32  ;;  %v363_v15 = vpop.xlane.xlu1 %362  ;;  %v152_v7 = vpop.xlane.xlu0 %151 }
 0x13e   :  { %v320_v16 = vadd.f32 %v315_v6, %v787_v34  ;;  %v153_v39 = vsel %vm84_vm7, %v152_v7, 0.0  ;;  %v380_v40 = vmul.f32 %v487_v52, %v376_v38 }
 0x13f   :  { %v522_v2 = vpop.eup %521  ;;  %v319_v41 = vadd.f32 %v313_v37, %v798_v46  ;;  %v154_v42 = vrot.slane %v153_v39, 4 }
 0x140   :  { %v317_v33 = vmul.f32 0.6931472, %v522_v2  ;;  %v378_v35 = vsub.f32 %v320_v16, %v360_v18  ;;  %v385_v46 = vsel %vm384_vm11, %v380_v40, 0.0 }
 0x141   :  { %v377_v63 = vsub.f32 %v319_v41, %v357_v28  ;;  %v118_v43 = vpop.xlane.xlu1 %117  ;;  %v155_v13 = vadd.f32 %v154_v42, %v153_v39 }
 0x142   :  { %v321_v44 = vadd.f32 %v317_v33, %v800_v47  ;;  %v119_v3 = vmax.f32 %v118_v43, 1.0  ;;  %v382_v5 = vmul.f32 %v489_v56, %v378_v35 }
 0x143   :  { %v381_v45 = vmul.f32 %v905_v23, %v377_v63  ;;  %v156_v34 = vrot.slane %v155_v13, 2 }
 0x144   :  { %v379_v51 = vsub.f32 %v321_v44, %v363_v15  ;;  %527 = vrcp.f32 %v119_v3  ;;  %v388_v56 = vsel %vm384_vm11, %v382_v5, 0.0 }
 0x145   :  { %v386_v10 = vsel %vm384_vm11, %v381_v45, 0.0  ;;  %v157_v53 = vadd.f32 %v156_v34, %v155_v13  ;;  %v90_v54 = vpop.xlane.xlu1 %89  ;;  %v524_v47 = vpop.eup %523  ;;  %529 = vrcp.f32 %v411_v50 }
 0x146   :  { %v387_v52 = vadd.f32 %v386_v10, %v385_v46  ;;  %v383_v55 = vmul.f32 %v916_v9, %v379_v51  ;;  %v91_v57 = vsel %vm84_vm7, %v90_v54, 0.0 }
 0x147   :  { %v158_v11 = vrot.slane %v157_v53, 1  ;;  %v92_v23 = vrot.slane %v91_v57, 4 }
 0x148   :  { %v389_v1 = vadd.f32 %v388_v56, %v387_v52  ;;  %v390_v22 = vsel %vm384_vm11, %v383_v55, 0.0 }
 0x149   :  { %v526_v25 = vpop.eup %525  ;;  %v159_v58 = vadd.f32 %v158_v11, %v157_v53  ;;  %v93_v59 = vadd.f32 %v92_v23, %v91_v57  ;;  %v245_v4 = vpop.xlane.xlu1 %244 }
 0x14a   :  { %v391_v9 = vadd.f32 %v390_v22, %v389_v1  ;;  %v263_v8 = vmul.f32 %v524_v47, %v245_v4 }
 0x14b   :  { %v94_v60 = vrot.slane %v93_v59, 2  ;;  %v169_v14 = vmul.f32 %v526_v25, %v159_v58 }
 0x14c   :  { %v392_v61 = vrot.slane %v391_v9, 4  ;;  %264 = vst.msk [vmem:[#allocation4] sm:$0x1] %vm122_vm0, %v263_v8 }
 0x14d   :  { %v95_v17 = vadd.f32 %v94_v60, %v93_v59 }
 0x14e   :  { %542 = shalt.err (!%p539_p4)
}
 0x14f   :  { %434 = dma.vmem_to_hbm [thread:$0]  %s432_s4, 16, %s960_s10, [#allocation5]   ;;  %170 = vst.msk [vmem:[#allocation6] sm:$0x1] %vm122_vm0, %v169_v14  ;;  %v393_v12 = vadd.f32 %v392_v61, %v391_v9 }
 0x150   :  { %s551_s15 = scalar_lea.vmem %s442_s29, 16  ;;  %s555_s16 = scalar_lea.vmem %s442_s29, 32 }
 0x151   :  { %p552_p5 = scmp.ne.s32.totalorder %s442_s29, %s551_s15  ;;  %p556_p6 = scmp.lt.s32.totalorder %s442_s29, %s442_s29 }
 0x152   :  { %p557_p7 = scmp.lt.s32.totalorder %s555_s16, %s551_s15 }
 0x154   :  { %p558_p8 = por %p557_p7, %p556_p6 }
 0x156   :  { %p559_p9 = pnand %p558_p8, %p552_p5 }
 0x158   :  { %562 = shalt.err (!%p559_p9)
}
 0x159   :  { %444 = dma.vmem_to_hbm [thread:$0]  %s442_s29, 16, %s961_s11, [#allocation5]   ;;  %v96_v29 = vrot.slane %v95_v17, 1  ;;  %v394_v18 = vrot.slane %v393_v12, 2  ;;  %v528_v24 = vpop.eup %527 }
 0x15a   :  { %s623_s19 = smov [#allocation2]   ;;  %v530_v26 = vpop.eup %529  ;;  %s624_s10 = smov [#allocation7]  }
 0x15b   :  { %s421_s8 = sshll.u32 %s623_s19, 4  ;;  %v97_v19 = vadd.f32 %v96_v29, %v95_v17  ;;  %v395_v20 = vadd.f32 %v394_v18, %v393_v12  ;;  %s451_s3 = sshll.u32 %s624_s10, 4  ;;  %s422_s8 = int_to_ptr.vmem [resolvable:$true] %s421_s8  ;;  %s452_s3 = int_to_ptr.vmem [resolvable:$true] %s451_s3 }
 0x15c   :  { %s571_s20 = scalar_lea.vmem %s422_s8, 16  ;;  %s575_s21 = scalar_lea.vmem %s422_s8, 32 }
 0x15d   :  { %v121_v21 = vmul.f32 %v528_v24, %v97_v19  ;;  %v396_v0 = vrot.slane %v395_v20, 1  ;;  %p572_p10 = scmp.ne.s32.totalorder %s422_s8, %s571_s20  ;;  %p576_p11 = scmp.lt.s32.totalorder %s422_s8, %s422_s8 }
 0x15e   :  { %p577_p12 = scmp.lt.s32.totalorder %s575_s21, %s571_s20 }
 0x15f   :  { %123 = vst.msk [vmem:[#allocation2] sm:$0x1] %vm122_vm0, %v121_v21 }
 0x160   :  { %p578_p13 = por %p577_p12, %p576_p11 }
 0x162   :  { %p579_p0 = pnand %p578_p13, %p572_p10 }
 0x164   :  { %582 = shalt.err (!%p579_p0)
}
 0x165   :  { %424 = dma.vmem_to_hbm [thread:$0]  %s422_s8, 16, %s959_s9, [#allocation3]   ;;  %v397_v27 = vadd.f32 %v396_v0, %v395_v20 }
 0x166   :  { %s591_s23 = scalar_lea.vmem %s452_s3, 16  ;;  %s595_s24 = scalar_lea.vmem %s452_s3, 32 }
 0x167   :  { %v413_v28 = vmul.f32 %v530_v26, %v397_v27  ;;  %p592_p1 = scmp.ne.s32.totalorder %s452_s3, %s591_s23  ;;  %p596_p2 = scmp.lt.s32.totalorder %s452_s3, %s452_s3 }
 0x168   :  { %p597_p3 = scmp.lt.s32.totalorder %s595_s24, %s591_s23 }
 0x169   :  { %414 = vst.msk [vmem:[#allocation7] sm:$0x1] %vm122_vm0, %v413_v28 }
 0x16a   :  { %p598_p4 = por %p597_p3, %p596_p2 }
 0x16c   :  { %p599_p5 = pnand %p598_p4, %p592_p1 }
 0x16e   :  { %602 = shalt.err (!%p599_p5)
}
 0x16f   :  { %454 = dma.vmem_to_hbm [thread:$0]  %s452_s3, 16, %s962_s12, [#allocation8]  }
 0x170   :  { %611 = dma.done.wait [#allocation3], 16  }
 0x171   :  { %612 = vsyncadd [#allocation3], 4294967280 }
 0x172   :  { %613 = dma.done.wait [#allocation5], 32  }
 0x173   :  { %614 = vsyncadd [#allocation5], 4294967264 }
 0x174   :  { %615 = dma.done.wait [#allocation8], 16  }
 0x175   :  { %616 = vsyncadd [#allocation8], 4294967280 }
 0x176   :  { %467 = vsyncpa [#allocation3], 1 }
 0x177   :  { %468 = vsyncpa [#allocation5], 1 }
 0x178   :  { %469 = vsyncpa [#allocation8], 1 }

</bundles_post_ra>
